<compile_context>
chip_gen: v7x
topology: tpu7x:2x2x1
jax: 0.10.0
libtpu: 0.0.40
codegen_flags: <defaults>
</compile_context>

<pallas_src>
import functools
import math

import jax
import jax.numpy as jnp
import numpy as np
from jax.experimental import pallas as pl
from jax.experimental.pallas import tpu as pltpu


# ----------------------------------------------------------------------------
# Pallas kernel: full FCOS head for ONE FPN level (all batch elements fused).
# ----------------------------------------------------------------------------
def _fcos_head_kernel(
    lens_ref, scales_ref,       # SMEM: (levels,) int32 valid T, (levels,) f32 Scale
    x_ref,                      # (1, R, C) bf16,  R = N * Tmax
    tw_ref,                     # (2*L*3, C, C) bf16  folded tower taps (cls, box)
    tb_ref,                     # (2*L, 1, C)   f32   folded tower biases
    hw_ref,                     # (3, C, HA)    bf16  [io1 | lg | bb] taps
    hb_ref,                     # (1, HA)       f32
    mw_ref,                     # (2, C, C)     bf16  mix_fc halves (ct, bt)
    mb_ref,                     # (1, C)        f32
    iw_ref,                     # (C2, 1)       bf16  iou_scores final 1x1 conv
    ib_ref,                     # (1, 1)        f32
    out_ref,                    # (1, N, OUTP, Tmax) f32  packed, time on lanes
    *, N, Tmax, C, C2, L, NC, OUTW, OUTP,
):
    lvl = pl.program_id(0)
    R = N * Tmax

    x = x_ref[0].astype(jnp.float32)                                  # (R, C)

    # Hoisted full-width masks (computed once, reused in every layer).
    lt = jax.lax.broadcasted_iota(jnp.int32, (N, Tmax, C), 1).reshape(R, C)
    validf = (lt < lens_ref[lvl]).astype(jnp.float32)     # zero-padded tail rows
    firstf = (lt > 0).astype(jnp.float32)                 # t-1 pad / slab start
    lastf = (lt < Tmax - 1).astype(jnp.float32)           # t+1 pad / slab end
    scl = scales_ref[lvl]

    def shift_prev(a):          # a[t-1] with 'same' zero padding, no slab bleed
        return pltpu.roll(a, 1, 0) * firstf

    def shift_next(a):          # a[t+1]
        return pltpu.roll(a, R - 1, 0) * lastf

    def dot16(a, w):            # bf16 MXU operands, f32 accumulation
        return jnp.dot(a.astype(jnp.bfloat16), w,
                       preferred_element_type=jnp.float32)

    def conv3(a, w0, w1, w2, b):
        # Conv1d(k=3, pad=1) as three tap matmuls (no lane-axis concat).
        return dot16(shift_prev(a), w0) + dot16(a, w1) + dot16(shift_next(a), w2) + b

    # cls / bbox towers: (Conv1d -> folded BN -> ReLU) x L. Padded rows are
    # re-zeroed every layer so they never bleed through the k=3 window.
    ct = x * validf
    bt = ct
    for l in range(L):
        ci = (0 * L + l) * 3
        bi = (1 * L + l) * 3
        ct = jnp.maximum(conv3(ct, tw_ref[ci], tw_ref[ci + 1], tw_ref[ci + 2],
                               tb_ref[0 * L + l]), 0.0) * validf
        bt = jnp.maximum(conv3(bt, tw_ref[bi], tw_ref[bi + 1], tw_ref[bi + 2],
                               tb_ref[1 * L + l]), 0.0) * validf

    hw = hw_ref[...]
    hb = hb_ref[...]
    o_io, o_lg, o_bb = 0, C2, C2 + NC               # [io1 | lg | bb] packing

    def head(lo, hi):
        return hw[0, :, lo:hi], hw[1, :, lo:hi], hw[2, :, lo:hi], hb[:, lo:hi]

    logits = conv3(ct, *head(o_lg, o_lg + NC))                        # (R, NC)
    bbox = jnp.exp(scl * conv3(bt, *head(o_bb, o_bb + 2)))            # (R, 2)

    # mix_fc: 1x1 conv on concat([cls_tower, box_tower]) == two matmuls.
    mix = jnp.maximum(dot16(ct, mw_ref[0]) + dot16(bt, mw_ref[1]) + mb_ref[...],
                      0.0) * validf

    # iou_scores: Conv1d(C->C/2,k=3)+BN+ReLU -> Conv1d(C/2->1,k=1)
    io = jnp.maximum(conv3(mix, *head(o_io, o_io + C2)), 0.0)         # (R, C2)
    iou = dot16(io, iw_ref[...]) + ib_ref[...]                        # (R, 1)

    pieces = [logits, bbox, iou]
    if OUTP > OUTW:
        pieces.append(jnp.zeros((R, OUTP - OUTW), jnp.float32))
    pk = jnp.concatenate(pieces, axis=-1).reshape(N, Tmax, OUTP)
    for n in range(N):          # lane-dense write: (OUTP, Tmax), time on lanes
        out_ref[0, n] = jnp.transpose(pk[n])


# ----------------------------------------------------------------------------
# Host-side weight packing: fold BN, stack conv taps, consolidate small slabs.
# ----------------------------------------------------------------------------
def pack_params(p, dtype=jnp.bfloat16):
    L = p["cls_w"].shape[0]
    C = p["cls_w"].shape[2]

    cls_wf = p["cls_w"] * p["cls_s"][:, None, None, :]
    cls_bf = p["cls_b"] * p["cls_s"] + p["cls_t"]
    box_wf = p["box_w"] * p["box_s"][:, None, None, :]
    box_bf = p["box_b"] * p["box_s"] + p["box_t"]
    tower_w = jnp.concatenate([cls_wf, box_wf], axis=0).reshape(2 * L * 3, C, C)
    tower_b = jnp.concatenate([cls_bf, box_bf], axis=0).reshape(2 * L, 1, C)

    io1_wf = p["io1_w"] * p["io1_s"][0]
    io1_bf = p["io1_b"] * p["io1_s"] + p["io1_t"]
    # pack order [io1 | lg | bb] so the widest segment is lane-aligned at 0.
    head_w = jnp.concatenate([io1_wf, p["lg_w"], p["bb_w"]], axis=-1)
    head_b = jnp.concatenate([io1_bf, p["lg_b"], p["bb_b"]], axis=-1)

    mix_w = jnp.stack([p["mxc_w"], p["mxb_w"]], axis=0) * p["mx_s"][0]
    mix_b = p["mx_b"] * p["mx_s"] + p["mx_t"]

    return [
        tower_w.astype(dtype), tower_b.astype(jnp.float32),
        head_w.astype(dtype), head_b.astype(jnp.float32),
        mix_w.astype(dtype), mix_b.astype(jnp.float32),
        p["io2_w"].astype(dtype), p["io2_b"].astype(jnp.float32),
    ]


def _const_spec(arr):
    nd = arr.ndim
    return pl.BlockSpec(arr.shape, lambda lvl, _z=(0,) * nd: _z)


# ----------------------------------------------------------------------------
# FCOSModule forward (head over all levels + compute_locations).
# ----------------------------------------------------------------------------
def compute_locations_per_level(t, stride):
    shifts_t = jnp.arange(0, t * stride, stride, dtype=jnp.float32)
    return shifts_t + stride / 2.0


def fcos_module_forward(features_nct, params, scales, fpn_strides):
    """features_nct: list of (N, C, T_l) float32 feature maps (PyTorch NCT)."""
    num_levels = len(features_nct)
    N, C, _ = features_nct[0].shape
    Ts = [int(f.shape[-1]) for f in features_nct]
    Tpad = ((max(Ts) + 7) // 8) * 8
    R = N * Tpad
    L = params["cls_w"].shape[0]
    NC = params["lg_w"].shape[-1]
    C2 = params["io1_w"].shape[-1]
    OUTW = NC + 3
    OUTP = ((OUTW + 7) // 8) * 8

    weights = pack_params(params)

    # Stack levels into one zero-padded (levels, N*Tpad, C) bf16 slab (rows =
    # batch-major so each batch slab is contiguous along the sublane axis).
    xs = []
    for f in features_nct:
        x = jnp.transpose(f, (0, 2, 1)).astype(jnp.float32)     # (N, T, C)
        x = jnp.pad(x, ((0, 0), (0, Tpad - x.shape[1]), (0, 0)))
        xs.append(x.reshape(1, R, C))
    x_all = jnp.concatenate(xs, axis=0).astype(jnp.bfloat16)

    lens = jnp.asarray(Ts, jnp.int32)
    scl = jnp.asarray(scales, jnp.float32)

    kernel = functools.partial(
        _fcos_head_kernel, N=N, Tmax=Tpad, C=C, C2=C2, L=L,
        NC=NC, OUTW=OUTW, OUTP=OUTP)

    smem_spec = pl.BlockSpec(memory_space=pltpu.MemorySpace.SMEM)
    grid_spec = pltpu.PrefetchScalarGridSpec(
        num_scalar_prefetch=0,
        grid=(num_levels,),
        in_specs=[smem_spec, smem_spec,
                  pl.BlockSpec((1, R, C), lambda l: (l, 0, 0))]
        + [_const_spec(w) for w in weights],
        out_specs=pl.BlockSpec((1, N, OUTP, Tpad), lambda l: (l, 0, 0, 0)),
    )
    packed = pl.pallas_call(
        kernel,
        out_shape=jax.ShapeDtypeStruct((num_levels, N, OUTP, Tpad), jnp.float32),
        grid_spec=grid_spec,
        compiler_params=pltpu.CompilerParams(
            dimension_semantics=("parallel",),       # >=2 steps -> both v7x TCs
            vmem_limit_bytes=32 * 1024 * 1024),      # explicit budget (v7x 64MiB)
    )(lens, scl, x_all, *weights)

    box_cls, box_reg, centerness, iou_scores, locations = [], [], [], [], []
    for lvl, T_l in enumerate(Ts):
        sl = packed[lvl, :, :, :T_l]                 # already (N, ch, T) layout
        box_cls.append(sl[:, :NC, :])
        box_reg.append(sl[:, NC:NC + 2, :])
        iou_scores.append(sl[:, NC + 2:NC + 3, :])
        locations.append(compute_locations_per_level(T_l, fpn_strides[lvl]))
    # centerness list stays empty, exactly like FCOSHead.forward.
    return box_cls, box_reg, centerness, iou_scores, locations


# ----------------------------------------------------------------------------
# Deterministic parameter init (mirrors FCOSHead.__init__ shapes/init).
# ----------------------------------------------------------------------------
def init_params(key, C, num_classes, L, prior_prob):
    eps = 1e-5
    std = 0.01
    bn_scale = 1.0 / np.sqrt(1.0 + eps)      # gamma=1, running_var=1, mean=0
    ks = jax.random.split(key, 8)

    def bn(shape):
        return jnp.full(shape, bn_scale, jnp.float32), jnp.zeros(shape, jnp.float32)

    C2 = C // 2
    cls_s, cls_t = bn((L, C))
    box_s, box_t = bn((L, C))
    mx_s, mx_t = bn((1, C))
    io1_s, io1_t = bn((1, C2))
    bias_value = -math.log((1 - prior_prob) / prior_prob)

    return {
        "cls_w": std * jax.random.normal(ks[0], (L, 3, C, C), jnp.float32),
        "cls_b": jnp.zeros((L, C), jnp.float32),
        "cls_s": cls_s, "cls_t": cls_t,
        "box_w": std * jax.random.normal(ks[1], (L, 3, C, C), jnp.float32),
        "box_b": jnp.zeros((L, C), jnp.float32),
        "box_s": box_s, "box_t": box_t,
        "lg_w": std * jax.random.normal(ks[2], (3, C, num_classes), jnp.float32),
        "lg_b": jnp.full((1, num_classes), bias_value, jnp.float32),
        "bb_w": std * jax.random.normal(ks[3], (3, C, 2), jnp.float32),
        "bb_b": jnp.zeros((1, 2), jnp.float32),
        "mxc_w": std * jax.random.normal(ks[4], (C, C), jnp.float32),
        "mxb_w": std * jax.random.normal(ks[5], (C, C), jnp.float32),
        "mx_b": jnp.zeros((1, C), jnp.float32),
        "mx_s": mx_s, "mx_t": mx_t,
        "io1_w": std * jax.random.normal(ks[6], (3, C, C2), jnp.float32),
        "io1_b": jnp.zeros((1, C2), jnp.float32),
        "io1_s": io1_s, "io1_t": io1_t,
        "io2_w": std * jax.random.normal(ks[7], (C2, 1), jnp.float32),
        "io2_b": jnp.zeros((1, 1), jnp.float32),
    }


# ----------------------------------------------------------------------------
# Pure-JAX f32 reference (no Pallas) used only to validate the kernel numerics.
# ----------------------------------------------------------------------------
def _ref_conv3(x, w, b):                     # x: (N,T,Cin), w: (3,Cin,Cout)
    xp = jnp.pad(x, ((0, 0), (1, 1), (0, 0)))
    return (jnp.einsum("ntc,cd->ntd", xp[:, :-2], w[0])
            + jnp.einsum("ntc,cd->ntd", xp[:, 1:-1], w[1])
            + jnp.einsum("ntc,cd->ntd", xp[:, 2:], w[2]) + b)


def _ref_head_level(feature_nct, p, scale):
    x = jnp.transpose(feature_nct, (0, 2, 1))
    L = p["cls_w"].shape[0]
    ct, bt = x, x
    for l in range(L):
        ct = jnp.maximum(_ref_conv3(ct, p["cls_w"][l], p["cls_b"][l]) * p["cls_s"][l] + p["cls_t"][l], 0.0)
        bt = jnp.maximum(_ref_conv3(bt, p["box_w"][l], p["box_b"][l]) * p["box_s"][l] + p["box_t"][l], 0.0)
    logits = _ref_conv3(ct, p["lg_w"], p["lg_b"][0])
    bbox = jnp.exp(scale * _ref_conv3(bt, p["bb_w"], p["bb_b"][0]))
    mix = ct @ p["mxc_w"] + bt @ p["mxb_w"] + p["mx_b"][0]
    mix = jnp.maximum(mix * p["mx_s"][0] + p["mx_t"][0], 0.0)
    io = jnp.maximum(_ref_conv3(mix, p["io1_w"], p["io1_b"][0]) * p["io1_s"][0] + p["io1_t"][0], 0.0)
    iou = io @ p["io2_w"] + p["io2_b"][0]
    return (jnp.transpose(logits, (0, 2, 1)),
            jnp.transpose(bbox, (0, 2, 1)),
            jnp.transpose(iou, (0, 2, 1)))


# ----------------------------------------------------------------------------
if __name__ == "__main__":
    cfg = dict(
        fcos_num_class=4,          # -> num_classes = 3
        fcos_conv_layers=2,
        fcos_prior_prob=0.01,
        fpn_stride=[4, 8, 16],
        is_first_stage=True,
    )
    in_channels = 32
    N = 2
    level_T = [32, 16, 8]

    key = jax.random.PRNGKey(0)
    kp, kf = jax.random.split(key)
    params = init_params(kp, in_channels, cfg["fcos_num_class"] - 1,
                         cfg["fcos_conv_layers"], cfg["fcos_prior_prob"])
    scales = [1.0, 1.0, 1.0]       # Scale(init_value=1.0) x 3

    fkeys = jax.random.split(kf, len(level_T))
    features = [jax.random.normal(fkeys[i], (N, in_channels, level_T[i]), jnp.float32)
                for i in range(len(level_T))]

    box_cls, box_reg, centerness, iou_scores, locations = fcos_module_forward(
        features, params, scales, cfg["fpn_stride"])

    for arrs in (box_cls, box_reg, iou_scores, locations):
        for a in arrs:
            jax.block_until_ready(a)

    # Validate against the pure-JAX f32 reference (kernel MXU operands are
    # bf16 with f32 accumulation, hence the looser tolerance).
    for lvl, feat in enumerate(features):
        r_lg, r_bb, r_io = _ref_head_level(feat, params, scales[lvl])
        np.testing.assert_allclose(np.asarray(box_cls[lvl]), np.asarray(r_lg), rtol=2e-2, atol=2e-2)
        np.testing.assert_allclose(np.asarray(box_reg[lvl]), np.asarray(r_bb), rtol=2e-2, atol=2e-2)
        np.testing.assert_allclose(np.asarray(iou_scores[lvl]), np.asarray(r_io), rtol=2e-2, atol=2e-2)

    # Shape checks against PyTorch semantics.
    for lvl, T in enumerate(level_T):
        assert box_cls[lvl].shape == (N, cfg["fcos_num_class"] - 1, T)
        assert box_reg[lvl].shape == (N, 2, T)
        assert iou_scores[lvl].shape == (N, 1, T)
        assert locations[lvl].shape == (T,)
    assert centerness == []

    print("KERNEL_OK")
</pallas_src>

<mosaic_0001>
module attributes {stable_mosaic.version = 11 : i64} {
  func.func @_fcos_head_kernel(%arg0: i32, %arg1: memref<3xi32, #tpu.memory_space<smem>>, %arg2: memref<3xf32, #tpu.memory_space<smem>>, %arg3: memref<1x64x32xbf16, #tpu.memory_space<vmem>>, %arg4: memref<12x32x32xbf16, #tpu.memory_space<vmem>>, %arg5: memref<4x1x32xf32, #tpu.memory_space<vmem>>, %arg6: memref<3x32x21xbf16, #tpu.memory_space<vmem>>, %arg7: memref<1x21xf32, #tpu.memory_space<vmem>>, %arg8: memref<2x32x32xbf16, #tpu.memory_space<vmem>>, %arg9: memref<1x32xf32, #tpu.memory_space<vmem>>, %arg10: memref<16x1xbf16, #tpu.memory_space<vmem>>, %arg11: memref<1x1xf32, #tpu.memory_space<vmem>>, %arg12: memref<1x2x8x32xf32, #tpu.memory_space<vmem>>) attributes {dimension_semantics = [#tpu.dimension_semantics<parallel>], iteration_bounds = array<i64: 3>, scalar_prefetch = 0 : i64, scratch_operands = 0 : i64, tpu.core_type = #tpu.core_type<tc>, window_params = [{transform_indices = @transform_0, window_bounds = array<i64: 3>}, {transform_indices = @transform_1, window_bounds = array<i64: 3>}, {transform_indices = @transform_2, window_bounds = array<i64: 1, 64, 32>}, {pipeline_mode = #tpu.pipeline_mode<synchronous>, transform_indices = @transform_3, window_bounds = array<i64: 12, 32, 32>}, {pipeline_mode = #tpu.pipeline_mode<synchronous>, transform_indices = @transform_4, window_bounds = array<i64: 4, 1, 32>}, {pipeline_mode = #tpu.pipeline_mode<synchronous>, transform_indices = @transform_5, window_bounds = array<i64: 3, 32, 21>}, {pipeline_mode = #tpu.pipeline_mode<synchronous>, transform_indices = @transform_6, window_bounds = array<i64: 1, 21>}, {pipeline_mode = #tpu.pipeline_mode<synchronous>, transform_indices = @transform_7, window_bounds = array<i64: 2, 32, 32>}, {pipeline_mode = #tpu.pipeline_mode<synchronous>, transform_indices = @transform_8, window_bounds = array<i64: 1, 32>}, {pipeline_mode = #tpu.pipeline_mode<synchronous>, transform_indices = @transform_9, window_bounds = array<i64: 16, 1>}, {pipeline_mode = #tpu.pipeline_mode<synchronous>, transform_indices = @transform_10, window_bounds = array<i64: 1, 1>}, {transform_indices = @transform_11, window_bounds = array<i64: 1, 2, 8, 32>}]} {
    %c0 = arith.constant 0 : index
    %c0_0 = arith.constant 0 : index
    %c0_1 = arith.constant 0 : index
    %0 = vector.load %arg3[%c0, %c0_0, %c0_1] : memref<1x64x32xbf16, #tpu.memory_space<vmem>>, vector<1x64x32xbf16>
    %1 = vector.shape_cast %0 : vector<1x64x32xbf16> to vector<64x32xbf16>
    %2 = arith.extf %1 : vector<64x32xbf16> to vector<64x32xf32>
    %3 = tpu.iota {dimensions = array<i32: 1>} : vector<2x32x32xi32>
    %4 = vector.shape_cast %3 : vector<2x32x32xi32> to vector<64x32xi32>
    %5 = arith.index_cast %arg0 : i32 to index
    %6 = memref.load %arg1[%5] : memref<3xi32, #tpu.memory_space<smem>>
    %7 = vector.broadcast %6 : i32 to vector<64x32xi32>
    %8 = arith.cmpi slt, %4, %7 : vector<64x32xi32>
    %9 = arith.extui %8 : vector<64x32xi1> to vector<64x32xi32>
    %10 = arith.sitofp %9 : vector<64x32xi32> to vector<64x32xf32>
    %c0_i32 = arith.constant 0 : i32
    %11 = vector.broadcast %c0_i32 : i32 to vector<64x32xi32>
    %12 = arith.cmpi sgt, %4, %11 : vector<64x32xi32>
    %13 = arith.extui %12 : vector<64x32xi1> to vector<64x32xi32>
    %14 = arith.sitofp %13 : vector<64x32xi32> to vector<64x32xf32>
    %c31_i32 = arith.constant 31 : i32
    %15 = vector.broadcast %c31_i32 : i32 to vector<64x32xi32>
    %16 = arith.cmpi slt, %4, %15 : vector<64x32xi32>
    %17 = arith.extui %16 : vector<64x32xi1> to vector<64x32xi32>
    %18 = arith.sitofp %17 : vector<64x32xi32> to vector<64x32xf32>
    %19 = arith.index_cast %arg0 : i32 to index
    %20 = memref.load %arg2[%19] : memref<3xf32, #tpu.memory_space<smem>>
    %21 = arith.mulf %2, %10 : vector<64x32xf32>
    %c0_2 = arith.constant 0 : index
    %c0_3 = arith.constant 0 : index
    %c0_4 = arith.constant 0 : index
    %22 = vector.load %arg4[%c0_2, %c0_3, %c0_4] : memref<12x32x32xbf16, #tpu.memory_space<vmem>>, vector<1x32x32xbf16>
    %23 = vector.shape_cast %22 : vector<1x32x32xbf16> to vector<32x32xbf16>
    %c1 = arith.constant 1 : index
    %c0_5 = arith.constant 0 : index
    %c0_6 = arith.constant 0 : index
    %24 = vector.load %arg4[%c1, %c0_5, %c0_6] : memref<12x32x32xbf16, #tpu.memory_space<vmem>>, vector<1x32x32xbf16>
    %25 = vector.shape_cast %24 : vector<1x32x32xbf16> to vector<32x32xbf16>
    %c2 = arith.constant 2 : index
    %c0_7 = arith.constant 0 : index
    %c0_8 = arith.constant 0 : index
    %26 = vector.load %arg4[%c2, %c0_7, %c0_8] : memref<12x32x32xbf16, #tpu.memory_space<vmem>>, vector<1x32x32xbf16>
    %27 = vector.shape_cast %26 : vector<1x32x32xbf16> to vector<32x32xbf16>
    %c0_9 = arith.constant 0 : index
    %c0_10 = arith.constant 0 : index
    %c0_11 = arith.constant 0 : index
    %28 = vector.load %arg5[%c0_9, %c0_10, %c0_11] : memref<4x1x32xf32, #tpu.memory_space<vmem>>, vector<1x1x32xf32>
    %29 = vector.shape_cast %28 : vector<1x1x32xf32> to vector<1x32xf32>
    %c1_i32 = arith.constant 1 : i32
    %30 = tpu.dynamic_rotate %21 by %c1_i32 dim 0 : vector<64x32xf32>, i32 -> vector<64x32xf32>
    %31 = arith.mulf %30, %14 : vector<64x32xf32>
    %32 = arith.truncf %31 : vector<64x32xf32> to vector<64x32xbf16>
    %cst = arith.constant dense<0.000000e+00> : vector<64x32xf32>
    %33 = tpu.matmul %32, %23, %cst {dimension_numbers = #tpu.dot_dimension_numbers<[1], [0], [0], [1], [0, 0, 1, 1], [], []>} : vector<64x32xbf16>, vector<32x32xbf16>, vector<64x32xf32> -> vector<64x32xf32>
    %34 = arith.truncf %21 : vector<64x32xf32> to vector<64x32xbf16>
    %cst_12 = arith.constant dense<0.000000e+00> : vector<64x32xf32>
    %35 = tpu.matmul %34, %25, %cst_12 {dimension_numbers = #tpu.dot_dimension_numbers<[1], [0], [0], [1], [0, 0, 1, 1], [], []>} : vector<64x32xbf16>, vector<32x32xbf16>, vector<64x32xf32> -> vector<64x32xf32>
    %36 = arith.addf %33, %35 : vector<64x32xf32>
    %c63_i32 = arith.constant 63 : i32
    %37 = tpu.dynamic_rotate %21 by %c63_i32 dim 0 : vector<64x32xf32>, i32 -> vector<64x32xf32>
    %38 = arith.mulf %37, %18 : vector<64x32xf32>
    %39 = arith.truncf %38 : vector<64x32xf32> to vector<64x32xbf16>
    %cst_13 = arith.constant dense<0.000000e+00> : vector<64x32xf32>
    %40 = tpu.matmul %39, %27, %cst_13 {dimension_numbers = #tpu.dot_dimension_numbers<[1], [0], [0], [1], [0, 0, 1, 1], [], []>} : vector<64x32xbf16>, vector<32x32xbf16>, vector<64x32xf32> -> vector<64x32xf32>
    %41 = arith.addf %36, %40 : vector<64x32xf32>
    %42 = vector.broadcast %29 : vector<1x32xf32> to vector<64x32xf32>
    %43 = arith.addf %41, %42 : vector<64x32xf32>
    %cst_14 = arith.constant 0.000000e+00 : f32
    %44 = vector.broadcast %cst_14 : f32 to vector<64x32xf32>
    %45 = arith.maximumf %43, %44 : vector<64x32xf32>
    %46 = arith.mulf %45, %10 : vector<64x32xf32>
    %c6 = arith.constant 6 : index
    %c0_15 = arith.constant 0 : index
    %c0_16 = arith.constant 0 : index
    %47 = vector.load %arg4[%c6, %c0_15, %c0_16] : memref<12x32x32xbf16, #tpu.memory_space<vmem>>, vector<1x32x32xbf16>
    %48 = vector.shape_cast %47 : vector<1x32x32xbf16> to vector<32x32xbf16>
    %c7 = arith.constant 7 : index
    %c0_17 = arith.constant 0 : index
    %c0_18 = arith.constant 0 : index
    %49 = vector.load %arg4[%c7, %c0_17, %c0_18] : memref<12x32x32xbf16, #tpu.memory_space<vmem>>, vector<1x32x32xbf16>
    %50 = vector.shape_cast %49 : vector<1x32x32xbf16> to vector<32x32xbf16>
    %c8 = arith.constant 8 : index
    %c0_19 = arith.constant 0 : index
    %c0_20 = arith.constant 0 : index
    %51 = vector.load %arg4[%c8, %c0_19, %c0_20] : memref<12x32x32xbf16, #tpu.memory_space<vmem>>, vector<1x32x32xbf16>
    %52 = vector.shape_cast %51 : vector<1x32x32xbf16> to vector<32x32xbf16>
    %c2_21 = arith.constant 2 : index
    %c0_22 = arith.constant 0 : index
    %c0_23 = arith.constant 0 : index
    %53 = vector.load %arg5[%c2_21, %c0_22, %c0_23] : memref<4x1x32xf32, #tpu.memory_space<vmem>>, vector<1x1x32xf32>
    %54 = vector.shape_cast %53 : vector<1x1x32xf32> to vector<1x32xf32>
    %c1_i32_24 = arith.constant 1 : i32
    %55 = tpu.dynamic_rotate %21 by %c1_i32_24 dim 0 : vector<64x32xf32>, i32 -> vector<64x32xf32>
    %56 = arith.mulf %55, %14 : vector<64x32xf32>
    %57 = arith.truncf %56 : vector<64x32xf32> to vector<64x32xbf16>
    %cst_25 = arith.constant dense<0.000000e+00> : vector<64x32xf32>
    %58 = tpu.matmul %57, %48, %cst_25 {dimension_numbers = #tpu.dot_dimension_numbers<[1], [0], [0], [1], [0, 0, 1, 1], [], []>} : vector<64x32xbf16>, vector<32x32xbf16>, vector<64x32xf32> -> vector<64x32xf32>
    %59 = arith.truncf %21 : vector<64x32xf32> to vector<64x32xbf16>
    %cst_26 = arith.constant dense<0.000000e+00> : vector<64x32xf32>
    %60 = tpu.matmul %59, %50, %cst_26 {dimension_numbers = #tpu.dot_dimension_numbers<[1], [0], [0], [1], [0, 0, 1, 1], [], []>} : vector<64x32xbf16>, vector<32x32xbf16>, vector<64x32xf32> -> vector<64x32xf32>
    %61 = arith.addf %58, %60 : vector<64x32xf32>
    %c63_i32_27 = arith.constant 63 : i32
    %62 = tpu.dynamic_rotate %21 by %c63_i32_27 dim 0 : vector<64x32xf32>, i32 -> vector<64x32xf32>
    %63 = arith.mulf %62, %18 : vector<64x32xf32>
    %64 = arith.truncf %63 : vector<64x32xf32> to vector<64x32xbf16>
    %cst_28 = arith.constant dense<0.000000e+00> : vector<64x32xf32>
    %65 = tpu.matmul %64, %52, %cst_28 {dimension_numbers = #tpu.dot_dimension_numbers<[1], [0], [0], [1], [0, 0, 1, 1], [], []>} : vector<64x32xbf16>, vector<32x32xbf16>, vector<64x32xf32> -> vector<64x32xf32>
    %66 = arith.addf %61, %65 : vector<64x32xf32>
    %67 = vector.broadcast %54 : vector<1x32xf32> to vector<64x32xf32>
    %68 = arith.addf %66, %67 : vector<64x32xf32>
    %cst_29 = arith.constant 0.000000e+00 : f32
    %69 = vector.broadcast %cst_29 : f32 to vector<64x32xf32>
    %70 = arith.maximumf %68, %69 : vector<64x32xf32>
    %71 = arith.mulf %70, %10 : vector<64x32xf32>
    %c3 = arith.constant 3 : index
    %c0_30 = arith.constant 0 : index
    %c0_31 = arith.constant 0 : index
    %72 = vector.load %arg4[%c3, %c0_30, %c0_31] : memref<12x32x32xbf16, #tpu.memory_space<vmem>>, vector<1x32x32xbf16>
    %73 = vector.shape_cast %72 : vector<1x32x32xbf16> to vector<32x32xbf16>
    %c4 = arith.constant 4 : index
    %c0_32 = arith.constant 0 : index
    %c0_33 = arith.constant 0 : index
    %74 = vector.load %arg4[%c4, %c0_32, %c0_33] : memref<12x32x32xbf16, #tpu.memory_space<vmem>>, vector<1x32x32xbf16>
    %75 = vector.shape_cast %74 : vector<1x32x32xbf16> to vector<32x32xbf16>
    %c5 = arith.constant 5 : index
    %c0_34 = arith.constant 0 : index
    %c0_35 = arith.constant 0 : index
    %76 = vector.load %arg4[%c5, %c0_34, %c0_35] : memref<12x32x32xbf16, #tpu.memory_space<vmem>>, vector<1x32x32xbf16>
    %77 = vector.shape_cast %76 : vector<1x32x32xbf16> to vector<32x32xbf16>
    %c1_36 = arith.constant 1 : index
    %c0_37 = arith.constant 0 : index
    %c0_38 = arith.constant 0 : index
    %78 = vector.load %arg5[%c1_36, %c0_37, %c0_38] : memref<4x1x32xf32, #tpu.memory_space<vmem>>, vector<1x1x32xf32>
    %79 = vector.shape_cast %78 : vector<1x1x32xf32> to vector<1x32xf32>
    %c1_i32_39 = arith.constant 1 : i32
    %80 = tpu.dynamic_rotate %46 by %c1_i32_39 dim 0 : vector<64x32xf32>, i32 -> vector<64x32xf32>
    %81 = arith.mulf %80, %14 : vector<64x32xf32>
    %82 = arith.truncf %81 : vector<64x32xf32> to vector<64x32xbf16>
    %cst_40 = arith.constant dense<0.000000e+00> : vector<64x32xf32>
    %83 = tpu.matmul %82, %73, %cst_40 {dimension_numbers = #tpu.dot_dimension_numbers<[1], [0], [0], [1], [0, 0, 1, 1], [], []>} : vector<64x32xbf16>, vector<32x32xbf16>, vector<64x32xf32> -> vector<64x32xf32>
    %84 = arith.truncf %46 : vector<64x32xf32> to vector<64x32xbf16>
    %cst_41 = arith.constant dense<0.000000e+00> : vector<64x32xf32>
    %85 = tpu.matmul %84, %75, %cst_41 {dimension_numbers = #tpu.dot_dimension_numbers<[1], [0], [0], [1], [0, 0, 1, 1], [], []>} : vector<64x32xbf16>, vector<32x32xbf16>, vector<64x32xf32> -> vector<64x32xf32>
    %86 = arith.addf %83, %85 : vector<64x32xf32>
    %c63_i32_42 = arith.constant 63 : i32
    %87 = tpu.dynamic_rotate %46 by %c63_i32_42 dim 0 : vector<64x32xf32>, i32 -> vector<64x32xf32>
    %88 = arith.mulf %87, %18 : vector<64x32xf32>
    %89 = arith.truncf %88 : vector<64x32xf32> to vector<64x32xbf16>
    %cst_43 = arith.constant dense<0.000000e+00> : vector<64x32xf32>
    %90 = tpu.matmul %89, %77, %cst_43 {dimension_numbers = #tpu.dot_dimension_numbers<[1], [0], [0], [1], [0, 0, 1, 1], [], []>} : vector<64x32xbf16>, vector<32x32xbf16>, vector<64x32xf32> -> vector<64x32xf32>
    %91 = arith.addf %86, %90 : vector<64x32xf32>
    %92 = vector.broadcast %79 : vector<1x32xf32> to vector<64x32xf32>
    %93 = arith.addf %91, %92 : vector<64x32xf32>
    %cst_44 = arith.constant 0.000000e+00 : f32
    %94 = vector.broadcast %cst_44 : f32 to vector<64x32xf32>
    %95 = arith.maximumf %93, %94 : vector<64x32xf32>
    %96 = arith.mulf %95, %10 : vector<64x32xf32>
    %c9 = arith.constant 9 : index
    %c0_45 = arith.constant 0 : index
    %c0_46 = arith.constant 0 : index
    %97 = vector.load %arg4[%c9, %c0_45, %c0_46] : memref<12x32x32xbf16, #tpu.memory_space<vmem>>, vector<1x32x32xbf16>
    %98 = vector.shape_cast %97 : vector<1x32x32xbf16> to vector<32x32xbf16>
    %c10 = arith.constant 10 : index
    %c0_47 = arith.constant 0 : index
    %c0_48 = arith.constant 0 : index
    %99 = vector.load %arg4[%c10, %c0_47, %c0_48] : memref<12x32x32xbf16, #tpu.memory_space<vmem>>, vector<1x32x32xbf16>
    %100 = vector.shape_cast %99 : vector<1x32x32xbf16> to vector<32x32xbf16>
    %c11 = arith.constant 11 : index
    %c0_49 = arith.constant 0 : index
    %c0_50 = arith.constant 0 : index
    %101 = vector.load %arg4[%c11, %c0_49, %c0_50] : memref<12x32x32xbf16, #tpu.memory_space<vmem>>, vector<1x32x32xbf16>
    %102 = vector.shape_cast %101 : vector<1x32x32xbf16> to vector<32x32xbf16>
    %c3_51 = arith.constant 3 : index
    %c0_52 = arith.constant 0 : index
    %c0_53 = arith.constant 0 : index
    %103 = vector.load %arg5[%c3_51, %c0_52, %c0_53] : memref<4x1x32xf32, #tpu.memory_space<vmem>>, vector<1x1x32xf32>
    %104 = vector.shape_cast %103 : vector<1x1x32xf32> to vector<1x32xf32>
    %c1_i32_54 = arith.constant 1 : i32
    %105 = tpu.dynamic_rotate %71 by %c1_i32_54 dim 0 : vector<64x32xf32>, i32 -> vector<64x32xf32>
    %106 = arith.mulf %105, %14 : vector<64x32xf32>
    %107 = arith.truncf %106 : vector<64x32xf32> to vector<64x32xbf16>
    %cst_55 = arith.constant dense<0.000000e+00> : vector<64x32xf32>
    %108 = tpu.matmul %107, %98, %cst_55 {dimension_numbers = #tpu.dot_dimension_numbers<[1], [0], [0], [1], [0, 0, 1, 1], [], []>} : vector<64x32xbf16>, vector<32x32xbf16>, vector<64x32xf32> -> vector<64x32xf32>
    %109 = arith.truncf %71 : vector<64x32xf32> to vector<64x32xbf16>
    %cst_56 = arith.constant dense<0.000000e+00> : vector<64x32xf32>
    %110 = tpu.matmul %109, %100, %cst_56 {dimension_numbers = #tpu.dot_dimension_numbers<[1], [0], [0], [1], [0, 0, 1, 1], [], []>} : vector<64x32xbf16>, vector<32x32xbf16>, vector<64x32xf32> -> vector<64x32xf32>
    %111 = arith.addf %108, %110 : vector<64x32xf32>
    %c63_i32_57 = arith.constant 63 : i32
    %112 = tpu.dynamic_rotate %71 by %c63_i32_57 dim 0 : vector<64x32xf32>, i32 -> vector<64x32xf32>
    %113 = arith.mulf %112, %18 : vector<64x32xf32>
    %114 = arith.truncf %113 : vector<64x32xf32> to vector<64x32xbf16>
    %cst_58 = arith.constant dense<0.000000e+00> : vector<64x32xf32>
    %115 = tpu.matmul %114, %102, %cst_58 {dimension_numbers = #tpu.dot_dimension_numbers<[1], [0], [0], [1], [0, 0, 1, 1], [], []>} : vector<64x32xbf16>, vector<32x32xbf16>, vector<64x32xf32> -> vector<64x32xf32>
    %116 = arith.addf %111, %115 : vector<64x32xf32>
    %117 = vector.broadcast %104 : vector<1x32xf32> to vector<64x32xf32>
    %118 = arith.addf %116, %117 : vector<64x32xf32>
    %cst_59 = arith.constant 0.000000e+00 : f32
    %119 = vector.broadcast %cst_59 : f32 to vector<64x32xf32>
    %120 = arith.maximumf %118, %119 : vector<64x32xf32>
    %121 = arith.mulf %120, %10 : vector<64x32xf32>
    %c0_60 = arith.constant 0 : index
    %c0_61 = arith.constant 0 : index
    %c0_62 = arith.constant 0 : index
    %122 = vector.load %arg6[%c0_60, %c0_61, %c0_62] : memref<3x32x21xbf16, #tpu.memory_space<vmem>>, vector<3x32x21xbf16>
    %c0_63 = arith.constant 0 : index
    %c0_64 = arith.constant 0 : index
    %123 = vector.load %arg7[%c0_63, %c0_64] : memref<1x21xf32, #tpu.memory_space<vmem>>, vector<1x21xf32>
    %124 = vector.extract_strided_slice %122 {offsets = [0, 0, 16], sizes = [1, 32, 3], strides = [1, 1, 1]} : vector<3x32x21xbf16> to vector<1x32x3xbf16>
    %125 = vector.shape_cast %124 : vector<1x32x3xbf16> to vector<32x3xbf16>
    %126 = vector.extract_strided_slice %122 {offsets = [1, 0, 16], sizes = [1, 32, 3], strides = [1, 1, 1]} : vector<3x32x21xbf16> to vector<1x32x3xbf16>
    %127 = vector.shape_cast %126 : vector<1x32x3xbf16> to vector<32x3xbf16>
    %128 = vector.extract_strided_slice %122 {offsets = [2, 0, 16], sizes = [1, 32, 3], strides = [1, 1, 1]} : vector<3x32x21xbf16> to vector<1x32x3xbf16>
    %129 = vector.shape_cast %128 : vector<1x32x3xbf16> to vector<32x3xbf16>
    %130 = vector.extract_strided_slice %123 {offsets = [0, 16], sizes = [1, 3], strides = [1, 1]} : vector<1x21xf32> to vector<1x3xf32>
    %c1_i32_65 = arith.constant 1 : i32
    %131 = tpu.dynamic_rotate %96 by %c1_i32_65 dim 0 : vector<64x32xf32>, i32 -> vector<64x32xf32>
    %132 = arith.mulf %131, %14 : vector<64x32xf32>
    %133 = arith.truncf %132 : vector<64x32xf32> to vector<64x32xbf16>
    %cst_66 = arith.constant dense<0.000000e+00> : vector<64x3xf32>
    %134 = tpu.matmul %133, %125, %cst_66 {dimension_numbers = #tpu.dot_dimension_numbers<[1], [0], [0], [1], [0, 0, 1, 1], [], []>} : vector<64x32xbf16>, vector<32x3xbf16>, vector<64x3xf32> -> vector<64x3xf32>
    %135 = arith.truncf %96 : vector<64x32xf32> to vector<64x32xbf16>
    %cst_67 = arith.constant dense<0.000000e+00> : vector<64x3xf32>
    %136 = tpu.matmul %135, %127, %cst_67 {dimension_numbers = #tpu.dot_dimension_numbers<[1], [0], [0], [1], [0, 0, 1, 1], [], []>} : vector<64x32xbf16>, vector<32x3xbf16>, vector<64x3xf32> -> vector<64x3xf32>
    %137 = arith.addf %134, %136 : vector<64x3xf32>
    %c63_i32_68 = arith.constant 63 : i32
    %138 = tpu.dynamic_rotate %96 by %c63_i32_68 dim 0 : vector<64x32xf32>, i32 -> vector<64x32xf32>
    %139 = arith.mulf %138, %18 : vector<64x32xf32>
    %140 = arith.truncf %139 : vector<64x32xf32> to vector<64x32xbf16>
    %cst_69 = arith.constant dense<0.000000e+00> : vector<64x3xf32>
    %141 = tpu.matmul %140, %129, %cst_69 {dimension_numbers = #tpu.dot_dimension_numbers<[1], [0], [0], [1], [0, 0, 1, 1], [], []>} : vector<64x32xbf16>, vector<32x3xbf16>, vector<64x3xf32> -> vector<64x3xf32>
    %142 = arith.addf %137, %141 : vector<64x3xf32>
    %143 = vector.broadcast %130 : vector<1x3xf32> to vector<64x3xf32>
    %144 = arith.addf %142, %143 : vector<64x3xf32>
    %145 = vector.extract_strided_slice %122 {offsets = [0, 0, 19], sizes = [1, 32, 2], strides = [1, 1, 1]} : vector<3x32x21xbf16> to vector<1x32x2xbf16>
    %146 = vector.shape_cast %145 : vector<1x32x2xbf16> to vector<32x2xbf16>
    %147 = vector.extract_strided_slice %122 {offsets = [1, 0, 19], sizes = [1, 32, 2], strides = [1, 1, 1]} : vector<3x32x21xbf16> to vector<1x32x2xbf16>
    %148 = vector.shape_cast %147 : vector<1x32x2xbf16> to vector<32x2xbf16>
    %149 = vector.extract_strided_slice %122 {offsets = [2, 0, 19], sizes = [1, 32, 2], strides = [1, 1, 1]} : vector<3x32x21xbf16> to vector<1x32x2xbf16>
    %150 = vector.shape_cast %149 : vector<1x32x2xbf16> to vector<32x2xbf16>
    %151 = vector.extract_strided_slice %123 {offsets = [0, 19], sizes = [1, 2], strides = [1, 1]} : vector<1x21xf32> to vector<1x2xf32>
    %c1_i32_70 = arith.constant 1 : i32
    %152 = tpu.dynamic_rotate %121 by %c1_i32_70 dim 0 : vector<64x32xf32>, i32 -> vector<64x32xf32>
    %153 = arith.mulf %152, %14 : vector<64x32xf32>
    %154 = arith.truncf %153 : vector<64x32xf32> to vector<64x32xbf16>
    %cst_71 = arith.constant dense<0.000000e+00> : vector<64x2xf32>
    %155 = tpu.matmul %154, %146, %cst_71 {dimension_numbers = #tpu.dot_dimension_numbers<[1], [0], [0], [1], [0, 0, 1, 1], [], []>} : vector<64x32xbf16>, vector<32x2xbf16>, vector<64x2xf32> -> vector<64x2xf32>
    %156 = arith.truncf %121 : vector<64x32xf32> to vector<64x32xbf16>
    %cst_72 = arith.constant dense<0.000000e+00> : vector<64x2xf32>
    %157 = tpu.matmul %156, %148, %cst_72 {dimension_numbers = #tpu.dot_dimension_numbers<[1], [0], [0], [1], [0, 0, 1, 1], [], []>} : vector<64x32xbf16>, vector<32x2xbf16>, vector<64x2xf32> -> vector<64x2xf32>
    %158 = arith.addf %155, %157 : vector<64x2xf32>
    %c63_i32_73 = arith.constant 63 : i32
    %159 = tpu.dynamic_rotate %121 by %c63_i32_73 dim 0 : vector<64x32xf32>, i32 -> vector<64x32xf32>
    %160 = arith.mulf %159, %18 : vector<64x32xf32>
    %161 = arith.truncf %160 : vector<64x32xf32> to vector<64x32xbf16>
    %cst_74 = arith.constant dense<0.000000e+00> : vector<64x2xf32>
    %162 = tpu.matmul %161, %150, %cst_74 {dimension_numbers = #tpu.dot_dimension_numbers<[1], [0], [0], [1], [0, 0, 1, 1], [], []>} : vector<64x32xbf16>, vector<32x2xbf16>, vector<64x2xf32> -> vector<64x2xf32>
    %163 = arith.addf %158, %162 : vector<64x2xf32>
    %164 = vector.broadcast %151 : vector<1x2xf32> to vector<64x2xf32>
    %165 = arith.addf %163, %164 : vector<64x2xf32>
    %166 = vector.broadcast %20 : f32 to vector<64x2xf32>
    %167 = arith.mulf %166, %165 : vector<64x2xf32>
    %168 = math.exp %167 : vector<64x2xf32>
    %c0_75 = arith.constant 0 : index
    %c0_76 = arith.constant 0 : index
    %c0_77 = arith.constant 0 : index
    %169 = vector.load %arg8[%c0_75, %c0_76, %c0_77] : memref<2x32x32xbf16, #tpu.memory_space<vmem>>, vector<1x32x32xbf16>
    %170 = vector.shape_cast %169 : vector<1x32x32xbf16> to vector<32x32xbf16>
    %171 = arith.truncf %96 : vector<64x32xf32> to vector<64x32xbf16>
    %cst_78 = arith.constant dense<0.000000e+00> : vector<64x32xf32>
    %172 = tpu.matmul %171, %170, %cst_78 {dimension_numbers = #tpu.dot_dimension_numbers<[1], [0], [0], [1], [0, 0, 1, 1], [], []>} : vector<64x32xbf16>, vector<32x32xbf16>, vector<64x32xf32> -> vector<64x32xf32>
    %c1_79 = arith.constant 1 : index
    %c0_80 = arith.constant 0 : index
    %c0_81 = arith.constant 0 : index
    %173 = vector.load %arg8[%c1_79, %c0_80, %c0_81] : memref<2x32x32xbf16, #tpu.memory_space<vmem>>, vector<1x32x32xbf16>
    %174 = vector.shape_cast %173 : vector<1x32x32xbf16> to vector<32x32xbf16>
    %175 = arith.truncf %121 : vector<64x32xf32> to vector<64x32xbf16>
    %cst_82 = arith.constant dense<0.000000e+00> : vector<64x32xf32>
    %176 = tpu.matmul %175, %174, %cst_82 {dimension_numbers = #tpu.dot_dimension_numbers<[1], [0], [0], [1], [0, 0, 1, 1], [], []>} : vector<64x32xbf16>, vector<32x32xbf16>, vector<64x32xf32> -> vector<64x32xf32>
    %177 = arith.addf %172, %176 : vector<64x32xf32>
    %c0_83 = arith.constant 0 : index
    %c0_84 = arith.constant 0 : index
    %178 = vector.load %arg9[%c0_83, %c0_84] : memref<1x32xf32, #tpu.memory_space<vmem>>, vector<1x32xf32>
    %179 = vector.broadcast %178 : vector<1x32xf32> to vector<64x32xf32>
    %180 = arith.addf %177, %179 : vector<64x32xf32>
    %cst_85 = arith.constant 0.000000e+00 : f32
    %181 = vector.broadcast %cst_85 : f32 to vector<64x32xf32>
    %182 = arith.maximumf %180, %181 : vector<64x32xf32>
    %183 = arith.mulf %182, %10 : vector<64x32xf32>
    %184 = vector.extract_strided_slice %122 {offsets = [0, 0, 0], sizes = [1, 32, 16], strides = [1, 1, 1]} : vector<3x32x21xbf16> to vector<1x32x16xbf16>
    %185 = vector.shape_cast %184 : vector<1x32x16xbf16> to vector<32x16xbf16>
    %186 = vector.extract_strided_slice %122 {offsets = [1, 0, 0], sizes = [1, 32, 16], strides = [1, 1, 1]} : vector<3x32x21xbf16> to vector<1x32x16xbf16>
    %187 = vector.shape_cast %186 : vector<1x32x16xbf16> to vector<32x16xbf16>
    %188 = vector.extract_strided_slice %122 {offsets = [2, 0, 0], sizes = [1, 32, 16], strides = [1, 1, 1]} : vector<3x32x21xbf16> to vector<1x32x16xbf16>
    %189 = vector.shape_cast %188 : vector<1x32x16xbf16> to vector<32x16xbf16>
    %190 = vector.extract_strided_slice %123 {offsets = [0, 0], sizes = [1, 16], strides = [1, 1]} : vector<1x21xf32> to vector<1x16xf32>
    %c1_i32_86 = arith.constant 1 : i32
    %191 = tpu.dynamic_rotate %183 by %c1_i32_86 dim 0 : vector<64x32xf32>, i32 -> vector<64x32xf32>
    %192 = arith.mulf %191, %14 : vector<64x32xf32>
    %193 = arith.truncf %192 : vector<64x32xf32> to vector<64x32xbf16>
    %cst_87 = arith.constant dense<0.000000e+00> : vector<64x16xf32>
    %194 = tpu.matmul %193, %185, %cst_87 {dimension_numbers = #tpu.dot_dimension_numbers<[1], [0], [0], [1], [0, 0, 1, 1], [], []>} : vector<64x32xbf16>, vector<32x16xbf16>, vector<64x16xf32> -> vector<64x16xf32>
    %195 = arith.truncf %183 : vector<64x32xf32> to vector<64x32xbf16>
    %cst_88 = arith.constant dense<0.000000e+00> : vector<64x16xf32>
    %196 = tpu.matmul %195, %187, %cst_88 {dimension_numbers = #tpu.dot_dimension_numbers<[1], [0], [0], [1], [0, 0, 1, 1], [], []>} : vector<64x32xbf16>, vector<32x16xbf16>, vector<64x16xf32> -> vector<64x16xf32>
    %197 = arith.addf %194, %196 : vector<64x16xf32>
    %c63_i32_89 = arith.constant 63 : i32
    %198 = tpu.dynamic_rotate %183 by %c63_i32_89 dim 0 : vector<64x32xf32>, i32 -> vector<64x32xf32>
    %199 = arith.mulf %198, %18 : vector<64x32xf32>
    %200 = arith.truncf %199 : vector<64x32xf32> to vector<64x32xbf16>
    %cst_90 = arith.constant dense<0.000000e+00> : vector<64x16xf32>
    %201 = tpu.matmul %200, %189, %cst_90 {dimension_numbers = #tpu.dot_dimension_numbers<[1], [0], [0], [1], [0, 0, 1, 1], [], []>} : vector<64x32xbf16>, vector<32x16xbf16>, vector<64x16xf32> -> vector<64x16xf32>
    %202 = arith.addf %197, %201 : vector<64x16xf32>
    %203 = vector.broadcast %190 : vector<1x16xf32> to vector<64x16xf32>
    %204 = arith.addf %202, %203 : vector<64x16xf32>
    %cst_91 = arith.constant 0.000000e+00 : f32
    %205 = vector.broadcast %cst_91 : f32 to vector<64x16xf32>
    %206 = arith.maximumf %204, %205 : vector<64x16xf32>
    %c0_92 = arith.constant 0 : index
    %c0_93 = arith.constant 0 : index
    %207 = vector.load %arg10[%c0_92, %c0_93] : memref<16x1xbf16, #tpu.memory_space<vmem>>, vector<16x1xbf16>
    %208 = arith.truncf %206 : vector<64x16xf32> to vector<64x16xbf16>
    %cst_94 = arith.constant dense<0.000000e+00> : vector<64x1xf32>
    %209 = tpu.matmul %208, %207, %cst_94 {dimension_numbers = #tpu.dot_dimension_numbers<[1], [0], [0], [1], [0, 0, 1, 1], [], []>} : vector<64x16xbf16>, vector<16x1xbf16>, vector<64x1xf32> -> vector<64x1xf32>
    %c0_95 = arith.constant 0 : index
    %c0_96 = arith.constant 0 : index
    %210 = vector.load %arg11[%c0_95, %c0_96] : memref<1x1xf32, #tpu.memory_space<vmem>>, vector<1x1xf32>
    %211 = vector.broadcast %210 : vector<1x1xf32> to vector<64x1xf32>
    %212 = arith.addf %209, %211 : vector<64x1xf32>
    %cst_97 = arith.constant 0.000000e+00 : f32
    %213 = vector.broadcast %cst_97 : f32 to vector<64x2xf32>
    %214 = tpu.concatenate %144, %168, %212, %213 in 1 : vector<64x3xf32>, vector<64x2xf32>, vector<64x1xf32>, vector<64x2xf32> -> vector<64x8xf32>
    %215 = vector.shape_cast %214 : vector<64x8xf32> to vector<2x32x8xf32>
    %216 = vector.extract_strided_slice %215 {offsets = [0, 0, 0], sizes = [1, 32, 8], strides = [1, 1, 1]} : vector<2x32x8xf32> to vector<1x32x8xf32>
    %217 = vector.shape_cast %216 : vector<1x32x8xf32> to vector<32x8xf32>
    %218 = tpu.transpose %217, [1, 0] : vector<32x8xf32> -> vector<8x32xf32>
    %c0_98 = arith.constant 0 : index
    %c0_99 = arith.constant 0 : index
    %c0_100 = arith.constant 0 : index
    %c0_101 = arith.constant 0 : index
    %219 = vector.load %arg12[%c0_98, %c0_99, %c0_100, %c0_101] : memref<1x2x8x32xf32, #tpu.memory_space<vmem>>, vector<1x1x8x32xf32>
    %220 = vector.shape_cast %219 : vector<1x1x8x32xf32> to vector<8x32xf32>
    %221 = vector.shape_cast %218 : vector<8x32xf32> to vector<1x1x8x32xf32>
    tpu.vector_store %arg12[%c0_98, %c0_99, %c0_100, %c0_101], %221 {strides = array<i32>} : memref<1x2x8x32xf32, #tpu.memory_space<vmem>>, vector<1x1x8x32xf32>,
    %222 = vector.extract_strided_slice %215 {offsets = [1, 0, 0], sizes = [1, 32, 8], strides = [1, 1, 1]} : vector<2x32x8xf32> to vector<1x32x8xf32>
    %223 = vector.shape_cast %222 : vector<1x32x8xf32> to vector<32x8xf32>
    %224 = tpu.transpose %223, [1, 0] : vector<32x8xf32> -> vector<8x32xf32>
    %c0_102 = arith.constant 0 : index
    %c1_103 = arith.constant 1 : index
    %c0_104 = arith.constant 0 : index
    %c0_105 = arith.constant 0 : index
    %225 = vector.load %arg12[%c0_102, %c1_103, %c0_104, %c0_105] : memref<1x2x8x32xf32, #tpu.memory_space<vmem>>, vector<1x1x8x32xf32>
    %226 = vector.shape_cast %225 : vector<1x1x8x32xf32> to vector<8x32xf32>
    %227 = vector.shape_cast %224 : vector<8x32xf32> to vector<1x1x8x32xf32>
    tpu.vector_store %arg12[%c0_102, %c1_103, %c0_104, %c0_105], %227 {strides = array<i32>} : memref<1x2x8x32xf32, #tpu.memory_space<vmem>>, vector<1x1x8x32xf32>,
    return
  }
  func.func @transform_0(%arg0: i32) -> i32 {
    %c0_i32 = arith.constant 0 : i32
    %c0_i32_0 = arith.constant 0 : i32
    return %c0_i32 : i32
  }
  func.func @transform_1(%arg0: i32) -> i32 {
    %c0_i32 = arith.constant 0 : i32
    %c0_i32_0 = arith.constant 0 : i32
    return %c0_i32 : i32
  }
  func.func @transform_2(%arg0: i32) -> (i32, i32, i32) {
    %c0_i32 = arith.constant 0 : i32
    %c0_i32_0 = arith.constant 0 : i32
    %c0_i32_1 = arith.constant 0 : i32
    return %arg0, %c0_i32, %c0_i32_0 : i32, i32, i32
  }
  func.func @transform_3(%arg0: i32) -> (i32, i32, i32) {
    %c0_i32 = arith.constant 0 : i32
    %c0_i32_0 = arith.constant 0 : i32
    %c0_i32_1 = arith.constant 0 : i32
    %c0_i32_2 = arith.constant 0 : i32
    return %c0_i32, %c0_i32_0, %c0_i32_1 : i32, i32, i32
  }
  func.func @transform_4(%arg0: i32) -> (i32, i32, i32) {
    %c0_i32 = arith.constant 0 : i32
    %c0_i32_0 = arith.constant 0 : i32
    %c0_i32_1 = arith.constant 0 : i32
    %c0_i32_2 = arith.constant 0 : i32
    return %c0_i32, %c0_i32_0, %c0_i32_1 : i32, i32, i32
  }
  func.func @transform_5(%arg0: i32) -> (i32, i32, i32) {
    %c0_i32 = arith.constant 0 : i32
    %c0_i32_0 = arith.constant 0 : i32
    %c0_i32_1 = arith.constant 0 : i32
    %c0_i32_2 = arith.constant 0 : i32
    return %c0_i32, %c0_i32_0, %c0_i32_1 : i32, i32, i32
  }
  func.func @transform_6(%arg0: i32) -> (i32, i32) {
    %c0_i32 = arith.constant 0 : i32
    %c0_i32_0 = arith.constant 0 : i32
    %c0_i32_1 = arith.constant 0 : i32
    return %c0_i32, %c0_i32_0 : i32, i32
  }
  func.func @transform_7(%arg0: i32) -> (i32, i32, i32) {
    %c0_i32 = arith.constant 0 : i32
    %c0_i32_0 = arith.constant 0 : i32
    %c0_i32_1 = arith.constant 0 : i32
    %c0_i32_2 = arith.constant 0 : i32
    return %c0_i32, %c0_i32_0, %c0_i32_1 : i32, i32, i32
  }
  func.func @transform_8(%arg0: i32) -> (i32, i32) {
    %c0_i32 = arith.constant 0 : i32
    %c0_i32_0 = arith.constant 0 : i32
    %c0_i32_1 = arith.constant 0 : i32
    return %c0_i32, %c0_i32_0 : i32, i32
  }
  func.func @transform_9(%arg0: i32) -> (i32, i32) {
    %c0_i32 = arith.constant 0 : i32
    %c0_i32_0 = arith.constant 0 : i32
    %c0_i32_1 = arith.constant 0 : i32
    return %c0_i32, %c0_i32_0 : i32, i32
  }
  func.func @transform_10(%arg0: i32) -> (i32, i32) {
    %c0_i32 = arith.constant 0 : i32
    %c0_i32_0 = arith.constant 0 : i32
    %c0_i32_1 = arith.constant 0 : i32
    return %c0_i32, %c0_i32_0 : i32, i32
  }
  func.func @transform_11(%arg0: i32) -> (i32, i32, i32, i32) {
    %c0_i32 = arith.constant 0 : i32
    %c0_i32_0 = arith.constant 0 : i32
    %c0_i32_1 = arith.constant 0 : i32
    %c0_i32_2 = arith.constant 0 : i32
    return %arg0, %c0_i32, %c0_i32_0, %c0_i32_1 : i32, i32, i32, i32
  }
}

</mosaic_0001>

<bundles_post_ra>
// kernel: tpu_custom_call.1
= control target key start
LH: loop header
LB: loop body
LE: loop exit
PB: predicated region body
PF: predicated region fallthrough
CT: control target
= control target key end

     0   :  { %s5880_s0 = inlined_call_operand.vmem [shape: s32[3], index: 0, kind: input, shape index: {}]   ;;  %s5881_s1 = inlined_call_operand.vmem [shape: f32[3], index: 1, kind: input, shape index: {}]   ;;  %s5882_s2 = inlined_call_operand.vmem [shape: bf16[3,64,32], index: 2, kind: input, shape index: {}]   ;;  %s5883_s3 = inlined_call_operand.vmem [shape: bf16[12,32,32], index: 3, kind: input, shape index: {}]   ;;  %s5884_s4 = inlined_call_operand.vmem [shape: f32[4,1,32], index: 4, kind: input, shape index: {}]   ;;  %s5885_s5 = inlined_call_operand.vmem [shape: bf16[3,32,21], index: 5, kind: input, shape index: {}]   ;;  %s5886_s6 = inlined_call_operand.vmem [shape: f32[1,21], index: 6, kind: input, shape index: {}]   ;;  %s5887_s7 = inlined_call_operand.vmem [shape: bf16[2,32,32], index: 7, kind: input, shape index: {}]   ;;  %s5888_s8 = inlined_call_operand.vmem [shape: f32[1,32], index: 8, kind: input, shape index: {}]   ;;  %s5889_s9 = inlined_call_operand.vmem [shape: bf16[16,1], index: 9, kind: input, shape index: {}]   ;;  %s5890_s10 = inlined_call_operand.<no memory space> [shape: f32[1,1], index: 10, kind: input, shape index: {}]   ;;  %s5891_s11 = inlined_call_operand.hbm [shape: f32[3,2,8,32], index: 11, kind: output, shape index: {}]  }
   0x1   :  { %v16_v0 = vstv %s5890_s10 }
   0x2   :  { %17 = vst [vmem:[#allocation2] sm:$0x1] %v16_v0 }
   0x3   :  { %18 = vsyncpa [#allocation5], 0 }
   0x4   :  { %19 = vsyncpa [#allocation7], 0 }
   0x5   :  { %20 = vsyncpa [#allocation4], 0 }
   0x6   :  { %22 = vsyncpa [#allocation4 + $0x1], 0  ;;  %s4593_s19 = smov 0   ;;  %s4595_s20 = smov 0  }
   0x7   :  { %s4597_s21 = smov 0   ;;  %s4599_s22 = smov 0  }
   0x8 LB: > { %s4614_s10 = sadd.s32 4294967295, %s4518_s22   ;;  %s3514_s23 = sadd.s32 4294967294, %s4518_s22   ;;  %s4518_s22 = sphi %s4599_s22, %s5973_s22   ;;  %s4514_s21 = sphi %s4597_s21, %s5972_s21   ;;  %s4510_s20 = sphi %s4595_s20, %s5971_s20   ;;  %s4506_s19 = sphi %s4593_s19, %s5970_s19  }
   0x9   : > { %s4618_s24 = sadd.s32 1, %s4518_s22   ;;  %s271_s25 = sadd.s32 1, %s4514_s21 }
   0xa   : > { %s268_s26 = ssub.s32 %s4518_s22, %s4618_s24  ;;  %p281_p0 = scmp.ne.s32.totalorder %s4514_s21, %s4510_s20 }
   0xb   : > { %p269_p1 = scmp.eq.s32.totalorder %s268_s26, 0  ;;  %p282_p2 = scmp.eq.s32.totalorder %s4614_s10, 2 }
   0xc   : > { %p287_p3 = scmp.ne.s32.totalorder %s4510_s20, %s4506_s19  ;;  %p288_p4 = scmp.eq.s32.totalorder %s3514_s23, 2 }
   0xd   : > { %s4629_s27 = scalar_select %p269_p1, %s4514_s21, %s271_s25  }
   0xe   : > { %p4631_p5 = por %p282_p2, %p281_p0  ;;  %p4635_p6 = por %p288_p4, %p287_p3 }
   0xf   : > { %p3515_p7 = scmp.ge.s32.totalorder %s4518_s22, 1  ;;  %p295_p8 = scmp.lt.s32.totalorder %s4518_s22, 4 }
  0x10   : > { %s5912_s28 = scalar_select %p4631_p5, 1, 0 }
  0x11   : > { %s5913_s29 = scalar_select %p4635_p6, 1, 0 }
  0x12   : > { %p5892_p9 = scmp.eq.s32.totalorder %s4614_s10, 0  ;;  %p4642_p10 = pnand %p3515_p7, %p295_p8 }
  0x13   : > { %s308_s14 = sshll.u32 %s5880_s0, 4  ;;  %s319_s17 = sshll.u32 %s5881_s1, 4  ;;  %s309_s14 = int_to_ptr.vmem [resolvable:$true] %s308_s14  ;;  %s320_s17 = int_to_ptr.vmem [resolvable:$true] %s319_s17 }
  0x14   : > { %s5914_s30 = scalar_select %p4642_p10, 1, 0 }
  0x15   : > { %p4306_p11 = pneg %p4642_p10  ;;  %s4418_s23 = scalar_lea.vmem %s309_s14, 16 }
  0x16   : > { %p4419_p13 = scmp.ne.s32.totalorder %s309_s14, %s4418_s23  ;;  %p4426_p3 = scmp.lt.s32.totalorder %s309_s14, %s309_s14 }
  0x17   : > { %p4656_p12 = pnand %p5892_p9, %p4306_p11  ;;  %p4427_p4 = scmp.lt.s32.totalorder %s4418_s23, %s4418_s23 }
  0x19   : > { %p4420_p0 = pneg %p4656_p12  ;;  %p4428_p7 = por %p4427_p4, %p4426_p3 }
  0x1b   : > { %p4421_p1 = pnand %p4420_p0, %p4419_p13 }
  0x1d   : > { %p4422_p2 = pneg %p4421_p1 }
  0x1f   : > { %p4429_p8 = pnand %p4428_p7, %p4422_p2 }
  0x21   : > { %4432 = shalt.err (!%p4429_p8)
}
  0x22   : > { %s4520_s25 = smov [#allocation3]   ;;  %s4433_s26 = scalar_lea.vmem %s320_s17, 16 }
  0x23   : > { %4309 = dma.vmem_to_smem (!%p4656_p12), %s309_s14, 16, %s4520_s25, [#allocation5]  }
  0x24   : > { %p4434_p11 = scmp.ne.s32.totalorder %s320_s17, %s4433_s26  ;;  %p4441_p5 = scmp.lt.s32.totalorder %s320_s17, %s320_s17 }
  0x25   : > { %p4442_p10 = scmp.lt.s32.totalorder %s4433_s26, %s4433_s26 }
  0x26   : > { %p4436_p9 = pnand %p4434_p11, %p4420_p0 }
  0x27   : > { %p4443_p13 = por %p4442_p10, %p4441_p5 }
  0x28   : > { %p4437_p6 = pneg %p4436_p9 }
  0x2a   : > { %p4444_p1 = pnand %p4443_p13, %p4437_p6 }
  0x2c   : > { %4447 = shalt.err (!%p4444_p1)
}
  0x2d   : > { %s4521_s12 = smov [#allocation6]   ;;  %p5916_p2 = scmp.ne.s32.totalorder %s5914_s30, 0 }
  0x2e   : > { %4312 = dma.vmem_to_smem (!%p4656_p12), %s320_s17, 16, %s4521_s12, [#allocation7]  }
  0x2f   : > { %364 = sbr.rel (%p5916_p2) target bundleno = 1641 (0x669), region = 64 }
  0x36   : > { %p5917_p3 = scmp.eq.s32.totalorder %s4614_s10, 0 }
  0x38   : > { %4493 = dma.done.wait (%p5917_p3), [#allocation5], 16   ;;  %p5918_p4 = pmov %p5917_p3 }
  0x39   : > { %p5919_p9 = pmov %p5917_p3 }
  0x3a   : > { %4495 = vsyncadd (%p5918_p4), [#allocation5], 4294967280 }
  0x3b   : > { %4497 = dma.done.wait (%p5919_p9), [#allocation7], 16   ;;  %p5920_p5 = pmov %p5917_p3 }
  0x3d   : > { %4499 = vsyncadd (%p5920_p5), [#allocation7], 4294967280 }
  0x3e   : > { %374 = sfence }
  0x3f   : > { %v4363_v1 = vld [vmem:[%s5883_s3 + $0x10] sm:$0xff]   ;;  %p409_p6 = scmp.lt.s32.totalorder %s4614_s10, 2  ;;  %v431_v2 = vlaneseq  ;;  %s436_s16 = sld [smem:[#allocation3 + %s4614_s10]]  ;;  %v4365_v4 = vld [vmem:[%s5883_s3 + $0x18] sm:$0xff]   ;;  %v4367_v7 = vld [vmem:[%s5883_s3] sm:$0xff]   ;;  %v4522_v19 = vmov 0.0  }
  0x40   : > { %v4364_v3 = vld [vmem:[%s5883_s3 + $0x70] sm:$0xff]   ;;  %3890 = vmatprep.subr.bf16.mxu0 %v4363_v1  ;;  %v4366_v5 = vld [vmem:[%s5883_s3 + $0x78] sm:$0xff]   ;;  %v4369_v23 = vld [vmem:[%s5883_s3 + $0x60] sm:$0xff]   ;;  %vm543_vm4 = vcmask 261120   ;;  %s4523_s30 = smov 112   ;;  %s4524_s13 = smov 109  }
  0x41   : > { %s410_s23 = scalar_select %p409_p6, %s4614_s10, 2  ;;  %3891 = vmatpush3.bf16.msra.mxu0 %v4363_v1  ;;  %3926 = vmatprep.subr.bf16.mxu1 %v4364_v3  ;;  %v4691_v6 = vshrl.u32 %v431_v2, 7  ;;  %v4368_v33 = vld [vmem:[%s5883_s3 + $0x8] sm:$0xff]   ;;  %v4371_v42 = vld [vmem:[%s5883_s3 + $0x20] sm:$0xff]   ;;  %vm3180_vm9 = vcmask 130048   ;;  %vm3322_vm10 = vcmask 23552  }
  0x42   : > { %3927 = vmatpush3.bf16.msra.mxu1 %v4364_v3  ;;  %3892 = vmatprep.subr.bf16.mxu0 %v4365_v4  ;;  %v4370_v34 = vld [vmem:[%s5883_s3 + $0x68] sm:$0xff]   ;;  %v4373_v47 = vld [vmem:[%s5883_s3 + $0x80] sm:$0xff]   ;;  %s474_s15 = sld [smem:[#allocation6 + %s4614_s10]]  ;;  %vm3331_vm11 = vcmask 39936   ;;  %vm3340_vm12 = vcmask 48128   ;;  %s3727_s26 = sshll.u32 %s4614_s10, 8 }
  0x43   : > { %s3726_s12 = sshll.u32 %s410_s23, 5  ;;  %3928 = vmatprep.subr.bf16.mxu1 %v4366_v5  ;;  %v433_v8 = vadd.s32 8, %v4691_v6  ;;  %v434_v9 = vadd.s32 16, %v4691_v6  ;;  %v4706_v12 = vadd.s32 24, %v4691_v6  ;;  %vm506_vm5 = vcmp.lt.s32.totalorder %v4691_v6, 1  ;;  %p5968_p12 = scmp.ne.s32.totalorder %s5912_s28, 0 }
  0x44   : > { %s4699_s17 = scalar_lea.vmem %s5882_s2, %s3726_s12  ;;  %vm450_vm6 = vcmp.gt.s32.totalorder %v4691_v6, 0  ;;  %vm718_vm7 = vcmp.lt.s32.totalorder %v4691_v6, 7  ;;  %s4527_s10 = smov [#allocation8]  }
  0x45   : > { %v3729_v10 = vld [vmem:[%s4699_s17] sm:$0xff]   ;;  %v3744_v11 = vld [vmem:[%s4699_s17 + $0x8] sm:$0xff]   ;;  %3893 = vmatpush3.bf16.msra.mxu0 %v4365_v4  ;;  %v437_v15 = vstv %s436_s16  ;;  %v3745_v18 = vld [vmem:[%s4699_s17 + $0x10] sm:$0xff]   ;;  %v4786_v52 = vsel %vm450_vm6, 1.0, %v4522_v19  ;;  %vm465_vm8 = vcmp.lt.s32.totalorder %v4706_v12, 31 }
  0x46   : > { %v3730_v13 = vunpack.c.l.bf16 %v3729_v10  ;;  %v3731_v14 = vunpack.c.h.bf16 %v3729_v10  ;;  %v3734_v16 = vunpack.c.l.bf16 %v3744_v11  ;;  %3929 = vmatpush3.bf16.msra.mxu1 %v4366_v5  ;;  %vm438_vm0 = vcmp.lt.s32.totalorder %v4691_v6, %v437_v15  ;;  %3902 = vmatprep.subr.bf16.mxu0 %v4367_v7  ;;  %v3746_v30 = vld [vmem:[%s4699_s17 + $0x18] sm:$0xff]   ;;  %v4375_v10 = vld [vmem:[%s5883_s3 + $0x40] sm:$0xff]   ;;  %s4525_s17 = smov 3  }
  0x47   : > { %vm439_vm1 = vcmp.lt.s32.totalorder %v433_v8, %v437_v15  ;;  %v3735_v17 = vunpack.c.h.bf16 %v3744_v11  ;;  %vm440_vm2 = vcmp.lt.s32.totalorder %v434_v9, %v437_v15  ;;  %v4711_v20 = vsel %vm438_vm0, 1.0, %v4522_v19  ;;  %3938 = vmatprep.subr.bf16.mxu1 %v4369_v23  ;;  %v4374_v9 = vld [vmem:[%s5883_s3 + $0x88] sm:$0xff]  }
  0x48   : > { %5921 = vst [vmem:[#allocation12_spill] sm:$0xff] %v4711_v20  ;;  %v4714_v21 = vsel %vm439_vm1, 1.0, %v4522_v19  ;;  %vm441_vm3 = vcmp.lt.s32.totalorder %v4706_v12, %v437_v15  ;;  %v4718_v22 = vsel %vm440_vm2, 1.0, %v4522_v19  ;;  %v4724_v24 = vmul.f32 %v3730_v13, %v4711_v20 }
  0x49   : > { %5922 = vst [vmem:[#allocation13_spill] sm:$0xff] %v4714_v21  ;;  %v4727_v25 = vmul.f32 %v3731_v14, %v4714_v21  ;;  %v4730_v26 = vsel %vm441_vm3, 1.0, %v4522_v19  ;;  %v4733_v27 = vmul.f32 %v3734_v16, %v4718_v22  ;;  %v3738_v29 = vunpack.c.l.bf16 %v3745_v18 }
  0x4a   : > { %5923 = vst [vmem:[#allocation14_spill] sm:$0xff] %v4730_v26  ;;  %v4736_v28 = vmul.f32 %v3735_v17, %v4730_v26  ;;  %v3739_v35 = vunpack.c.h.bf16 %v3745_v18  ;;  %v3742_v37 = vunpack.c.l.bf16 %v3746_v30  ;;  %v3743_v38 = vunpack.c.h.bf16 %v3746_v30 }
  0x4b   : > { %v527_v31 = vpack.c.bf16 %v4727_v25, %v4724_v24  ;;  %v4752_v36 = vmul.f32 %v3738_v29, %v4711_v20  ;;  %v499_v39 = vrot.slane %v4727_v25, 7  ;;  %v498_v43 = vrot.slane %v4724_v24, 7 }
  0x4c   : > { %v528_v32 = vpack.c.bf16 %v4736_v28, %v4733_v27  ;;  %v4760_v40 = vmul.f32 %v3739_v35, %v4714_v21  ;;  %v4763_v41 = vmul.f32 %v3742_v37, %v4718_v22  ;;  %v710_v44 = vrot.slane %v4724_v24, 1  ;;  %v4377_v24 = vld [vmem:[%s5883_s3 + $0xa0] sm:$0xff]   ;;  %v4376_v37 = vld [vmem:[%s5883_s3 + $0x48] sm:$0xff]  }
  0x4d   : > { %3894 = vmatprep.mubr.msk.bf16.mxu0 %vm543_vm4, %v527_v31  ;;  %3930 = vmatprep.mubr.msk.bf16.mxu1 %vm543_vm4, %v527_v31  ;;  %v4771_v45 = vmul.f32 %v3743_v38, %v4730_v26  ;;  %v502_v46 = vrot.slane %v4752_v36, 7  ;;  %v711_v48 = vrot.slane %v4727_v25, 1  ;;  %v501_v49 = vrot.slane %v4736_v28, 7  ;;  %v4378_v38 = vld [vmem:[%s5883_s3 + $0xa8] sm:$0xff]  }
  0x4e   : > { %3895 = vmatmul.mubr.msk.bf16.vlgmr.msra.gmra.mrb[0].mxu0 %vm543_vm4, %v528_v32  ;;  %3931 = vmatmul.mubr.msk.bf16.vlgmr.msra.gmra.mrb[0].mxu1 %vm543_vm4, %v528_v32  ;;  %v529_v50 = vpack.c.bf16 %v4760_v40, %v4752_v36  ;;  %v500_v54 = vrot.slane %v4733_v27, 7  ;;  %v713_v55 = vrot.slane %v4736_v28, 1  ;;  %v513_v56 = vsel %vm506_vm5, %v498_v43, %v499_v39 }
  0x4f   : > { %3903 = vmatpush3.bf16.msra.mxu0 %v4367_v7  ;;  %3939 = vmatpush3.bf16.msra.mxu1 %v4369_v23  ;;  %v530_v51 = vpack.c.bf16 %v4771_v45, %v4763_v41  ;;  %v505_v53 = vrot.slane %v4771_v45, 7  ;;  %v714_v57 = vrot.slane %v4752_v36, 1  ;;  %v503_v59 = vrot.slane %v4760_v40, 7  ;;  %v4372_v7 = vld [vmem:[%s5883_s3 + $0x28] sm:$0xff]  }
  0x50   : > { %3904 = vmatprep.subr.bf16.mxu0 %v4368_v33  ;;  %3940 = vmatprep.subr.bf16.mxu1 %v4370_v34  ;;  %v510_v60 = vsel %vm506_vm5, %v501_v49, %v502_v46  ;;  %v504_v62 = vrot.slane %v4763_v41, 7  ;;  %v712_v63 = vrot.slane %v4733_v27, 1  ;;  %v511_v1 = vsel %vm506_vm5, %v500_v54, %v501_v49 }
  0x51   : > { %3898 = vmatprep.mubr.msk.bf16.mxu0 %vm543_vm4, %v529_v50  ;;  %3934 = vmatprep.mubr.msk.bf16.mxu1 %vm543_vm4, %v529_v50  ;;  %v514_v58 = vsel %vm506_vm5, %v505_v53, %v498_v43  ;;  %v512_v2 = vsel %vm506_vm5, %v499_v39, %v500_v54  ;;  %v519_v3 = vmul.f32 %v4786_v52, %v510_v60  ;;  %v4843_v17 = vsel %vm465_vm8, 1.0, %v4522_v19  ;;  %v4886_v39 = vld [vmem:[%s5883_s3 + $0x30] sm:$0xff]   ;;  %v4910_v43 = vld [vmem:[%s5885_s5 + $0x18] sm:$0xff]  }
  0x52   : > { %v515_v61 = vmul.f32 %v4786_v52, %v514_v58  ;;  %v509_v4 = vsel %vm506_vm5, %v502_v46, %v503_v59  ;;  %v524_v5 = vpack.c.bf16 %v511_v1, %v512_v2  ;;  %v507_v11 = vsel %vm506_vm5, %v504_v62, %v505_v53  ;;  %v4392_v46 = vld [vmem:[%s5885_s5 + $0x28] sm:$0xff]  }
  0x53   : > { %3905 = vmatpush3.bf16.msra.mxu0 %v4368_v33  ;;  %3941 = vmatpush3.bf16.msra.mxu1 %v4370_v34  ;;  %v525_v8 = vpack.c.bf16 %v509_v4, %v519_v3  ;;  %v508_v13 = vsel %vm506_vm5, %v503_v59, %v504_v62  ;;  %v724_v14 = vsel %vm718_vm7, %v711_v48, %v712_v63  ;;  %v715_v25 = vrot.slane %v4760_v40, 1  ;;  %v4892_v40 = vld [vmem:[%s5883_s3 + $0x90] sm:$0xff]  }
  0x54   : > { %3914 = vmatprep.subr.bf16.mxu0 %v4371_v42  ;;  %3950 = vmatprep.subr.bf16.mxu1 %v4373_v47  ;;  %v523_v0 = vpack.c.bf16 %v513_v56, %v515_v61  ;;  %v725_v15 = vsel %vm718_vm7, %v710_v44, %v711_v48  ;;  %v526_v16 = vpack.c.bf16 %v507_v11, %v508_v13  ;;  %v716_v27 = vrot.slane %v4763_v41, 1  ;;  %v4898_v41 = vld [vmem:[%s5885_s5 + $0x10] sm:$0xff]   ;;  %v4945_v48 = vld [vmem:[%s5884_s4 + $0x2] ss:$0 sm:$0xff] }
  0x55   : > { %v735_v18 = vpack.c.bf16 %v724_v14, %v725_v15  ;;  %v722_v23 = vsel %vm718_vm7, %v713_v55, %v714_v57  ;;  %v723_v12 = vsel %vm718_vm7, %v712_v63, %v713_v55  ;;  %v717_v19 = vrot.slane %v4771_v45, 1  ;;  %1971 = vrot.lane.b32.xlu0 %v4898_v41, %s4523_s30  ;;  %v4390_v45 = vld [vmem:[%s5885_s5 + $0x20] sm:$0xff]  }
  0x56   : > { %3899 = vmatmul.mubr.msk.bf16.gmra.mrb[4].mxu0 %vm543_vm4, %v530_v51  ;;  %3935 = vmatmul.mubr.msk.bf16.gmra.mrb[4].mxu1 %vm543_vm4, %v530_v51  ;;  %v730_v28 = vmul.f32 %v4843_v17, %v722_v23  ;;  %v720_v29 = vsel %vm718_vm7, %v715_v25, %v716_v27  ;;  %v721_v30 = vsel %vm718_vm7, %v714_v57, %v715_v25 }
  0x57   : > { %3906 = vmatprep.mubr.msk.bf16.mxu0 %vm543_vm4, %v523_v0  ;;  %3942 = vmatprep.mubr.msk.bf16.mxu1 %vm543_vm4, %v523_v0  ;;  %v737_v32 = vpack.c.bf16 %v720_v29, %v721_v30  ;;  %v726_v33 = vsel %vm718_vm7, %v717_v19, %v710_v44  ;;  %v719_v35 = vsel %vm718_vm7, %v716_v27, %v717_v19  ;;  %v4391_v44 = vld [vmem:[%s5885_s5 + $0x8] sm:$0xff]  }
  0x58   : > { %v736_v31 = vpack.c.bf16 %v730_v28, %v723_v12  ;;  %v734_v34 = vmul.f32 %v4843_v17, %v726_v33 }
  0x59   : > { %1973 = vrot.lane.b32.xlu0 %v4910_v43, %s4523_s30 }
  0x5a   : > { %v738_v36 = vpack.c.bf16 %v734_v34, %v719_v35 }
  0x5d   : > { %2185 = vrot.lane.b32.xlu0 %v4390_v45, %s4523_s30 }
  0x5e   : > { %3907 = vmatmul.mubr.msk.bf16.vlgmr.msra.gmra.mrb[0].mxu0 %vm543_vm4, %v524_v5  ;;  %3943 = vmatmul.mubr.msk.bf16.vlgmr.msra.gmra.mrb[0].mxu1 %vm543_vm4, %v524_v5 }
  0x5f   : > { %3915 = vmatpush3.bf16.msra.mxu0 %v4371_v42  ;;  %3910 = vmatprep.mubr.msk.bf16.mxu0 %vm543_vm4, %v525_v8  ;;  %v4903_v42 = vld [vmem:[%s5885_s5] sm:$0xff]  }
  0x60   : > { %3916 = vmatprep.subr.bf16.mxu0 %v4372_v7  ;;  %3946 = vmatprep.mubr.msk.bf16.mxu1 %vm543_vm4, %v525_v8 }
  0x61   : > { %3951 = vmatpush3.bf16.msra.mxu1 %v4373_v47  ;;  %2064 = vrot.lane.b32.xlu1 %v4903_v42, %s4523_s30  ;;  %v4940_v47 = vld [vmem:[%s5884_s4] ss:$0 sm:$0xff] }
  0x62   : > { %3952 = vmatprep.subr.bf16.mxu1 %v4374_v9  ;;  %2324 = vrot.lane.b32.xlu0 %v4898_v41, %s4524_s13 }
  0x63   : > { %3917 = vmatpush3.bf16.msra.mxu0 %v4372_v7 }
  0x64   : > { %3962 = vmatprep.subr.bf16.mxu0 %v4375_v10 }
  0x65   : > { %3953 = vmatpush3.bf16.msra.mxu1 %v4374_v9  ;;  %2066 = vrot.lane.b32.xlu1 %v4391_v44, %s4523_s30 }
  0x66   : > { %3911 = vmatmul.mubr.msk.bf16.gmra.mrb[4].mxu0 %vm543_vm4, %v526_v16  ;;  %3947 = vmatmul.mubr.msk.bf16.gmra.mrb[4].mxu1 %vm543_vm4, %v526_v16 }
  0x67   : > { %3918 = vmatprep.mubr.msk.bf16.mxu0 %vm543_vm4, %v735_v18  ;;  %3954 = vmatprep.mubr.msk.bf16.mxu1 %vm543_vm4, %v735_v18 }
  0x68   : > { %3998 = vmatprep.subr.bf16.mxu1 %v4377_v24  ;;  %2407 = vrot.lane.b32.xlu0 %v4903_v42, %s4524_s13 }
  0x69   : > { %2187 = vrot.lane.b32.xlu1 %v4392_v46, %s4523_s30 }
  0x6c   : > { %2518 = vrot.lane.b32.xlu0 %v4390_v45, %s4524_s13 }
  0x6d   : > { %2326 = vrot.lane.b32.xlu1 %v4910_v43, %s4524_s13 }
  0x6e   : > { %3919 = vmatmul.mubr.msk.bf16.vlgmr.msra.gmra.mrb[0].mxu0 %vm543_vm4, %v736_v31  ;;  %3955 = vmatmul.mubr.msk.bf16.vlgmr.msra.gmra.mrb[0].mxu1 %vm543_vm4, %v736_v31 }
  0x6f   : > { %3922 = vmatprep.mubr.msk.bf16.mxu0 %vm543_vm4, %v737_v32  ;;  %3958 = vmatprep.mubr.msk.bf16.mxu1 %vm543_vm4, %v737_v32 }
  0x70   : > { %3963 = vmatpush3.bf16.msra.mxu0 %v4375_v10  ;;  %3999 = vmatpush3.bf16.msra.mxu1 %v4377_v24 }
  0x71   : > { %3964 = vmatprep.subr.bf16.mxu0 %v4376_v37  ;;  %4000 = vmatprep.subr.bf16.mxu1 %v4378_v38 }
  0x72   : > { %2409 = vrot.lane.b32.xlu1 %v4391_v44, %s4524_s13 }
  0x74   : > { %3965 = vmatpush3.bf16.msra.mxu0 %v4376_v37  ;;  %4001 = vmatpush3.bf16.msra.mxu1 %v4378_v38 }
  0x75   : > { %3974 = vmatprep.subr.bf16.mxu0 %v4886_v39  ;;  %4010 = vmatprep.subr.bf16.mxu1 %v4892_v40 }
  0x76   : > { %3923 = vmatmul.mubr.msk.bf16.gmra.mrb[4].mxu0 %vm543_vm4, %v738_v36  ;;  %3959 = vmatmul.mubr.msk.bf16.gmra.mrb[4].mxu1 %vm543_vm4, %v738_v36 }
  0x77   : > { %2520 = vrot.lane.b32.xlu1 %v4392_v46, %s4524_s13 }
 0x141   : > { %v3920_v49 = vpop.f32.mrb[0].mxu0  ;;  %v3956_v50 = vpop.f32.mrb[0].mxu1 }
 0x142   : > { %v844_v51 = vadd.f32 %v3920_v49, %v4940_v47  ;;  %v1130_v53 = vadd.f32 %v3956_v50, %v4945_v48  ;;  %v797_v54 = vpop.f32.mrb[1].mxu0  ;;  %v1083_v55 = vpop.f32.mrb[1].mxu1 }
 0x143   : > { %v842_v56 = vadd.f32 %v4940_v47, %v797_v54  ;;  %v1128_v57 = vadd.f32 %v4945_v48, %v1083_v55  ;;  %v3921_v58 = vpop.f32.mrb[2].mxu0  ;;  %v3957_v59 = vpop.f32.mrb[2].mxu1 }
 0x144   : > { %v852_v60 = vmax.f32 %v844_v51, 0.0  ;;  %v1138_v61 = vmax.f32 %v1130_v53, 0.0  ;;  %v845_v62 = vadd.f32 %v3921_v58, %v4940_v47  ;;  %v1131_v63 = vadd.f32 %v3957_v59, %v4945_v48  ;;  %v800_v0 = vpop.f32.mrb[3].mxu0  ;;  %v1086_v1 = vpop.f32.mrb[3].mxu1 }
 0x145   : > { %v850_v2 = vmax.f32 %v842_v56, 0.0  ;;  %v1136_v3 = vmax.f32 %v1128_v57, 0.0  ;;  %v843_v4 = vadd.f32 %v4940_v47, %v800_v0  ;;  %v1129_v5 = vadd.f32 %v4945_v48, %v1086_v1 }
 0x146   : > { %v4956_v7 = vmul.f32 %v4718_v22, %v852_v60  ;;  %v853_v8 = vmax.f32 %v845_v62, 0.0  ;;  %v1139_v9 = vmax.f32 %v1131_v63, 0.0  ;;  %v4959_v10 = vmul.f32 %v4718_v22, %v1138_v61 }
 0x147   : > { %v4962_v11 = vmul.f32 %v4711_v20, %v850_v2  ;;  %v851_v13 = vmax.f32 %v843_v4, 0.0  ;;  %v1137_v14 = vmax.f32 %v1129_v5, 0.0  ;;  %v4965_v15 = vmul.f32 %v4711_v20, %v1136_v3 }
 0x148   : > { %v1171_v16 = vrot.slane %v4956_v7, 7  ;;  %v1381_v18 = vrot.slane %v4956_v7, 1  ;;  %v1553_v23 = vrot.slane %v4959_v10, 7  ;;  %v5897_v25 = vrot.slane %v4959_v10, 1 }
 0x149   : > { %v3924_v27 = vpop.f32.mrb[4].mxu0  ;;  %v3960_v28 = vpop.f32.mrb[4].mxu1  ;;  %v1169_v12 = vrot.slane %v4962_v11, 7  ;;  %v4973_v19 = vmul.f32 %v4730_v26, %v853_v8  ;;  %v4976_v29 = vmul.f32 %v4730_v26, %v1139_v9  ;;  %v4979_v30 = vmul.f32 %v4714_v21, %v851_v13 }
 0x14a   : > { %v813_v31 = vpop.f32.mrb[5].mxu0  ;;  %v1099_v32 = vpop.f32.mrb[5].mxu1  ;;  %v4982_v33 = vmul.f32 %v4714_v21, %v1137_v14  ;;  %v848_v34 = vadd.f32 %v3924_v27, %v4940_v47  ;;  %v1134_v35 = vadd.f32 %v3960_v28, %v4945_v48  ;;  %v1551_v13 = vrot.slane %v4965_v15, 7 }
 0x14b   : > { %v846_v36 = vadd.f32 %v4940_v47, %v813_v31  ;;  %v3925_v24 = vpop.f32.mrb[6].mxu0  ;;  %v3961_v37 = vpop.f32.mrb[6].mxu1  ;;  %v1172_v38 = vrot.slane %v4973_v19, 7  ;;  %v1198_v44 = vpack.c.bf16 %v4973_v19, %v4956_v7  ;;  %v1382_v45 = vrot.slane %v4973_v19, 1 }
 0x14c   : > { %v1554_v46 = vrot.slane %v4976_v29, 7  ;;  %v816_v49 = vpop.f32.mrb[7].mxu0  ;;  %v1102_v50 = vpop.f32.mrb[7].mxu1  ;;  %v1580_v51 = vpack.c.bf16 %v4976_v29, %v4959_v10  ;;  %v1764_v53 = vrot.slane %v4976_v29, 1  ;;  %v1170_v54 = vrot.slane %v4979_v30, 7 }
 0x14d   : > { %v1132_v55 = vadd.f32 %v4945_v48, %v1099_v32  ;;  %v5001_v56 = vsel %vm506_vm5, %v1171_v16, %v1172_v38  ;;  %v5007_v57 = vsel %vm718_vm7, %v1381_v18, %v1382_v45  ;;  %v1552_v59 = vrot.slane %v4982_v33, 7 }
 0x14e   : > { %v5013_v58 = vsel %vm506_vm5, %v1553_v23, %v1554_v46  ;;  %v5021_v61 = vsel %vm718_vm7, %v5897_v25, %v1764_v53  ;;  %v5025_v62 = vsel %vm506_vm5, %v1170_v54, %v1171_v16  ;;  %v856_v63 = vmax.f32 %v848_v34, 0.0 }
 0x14f   : > { %v5033_v1 = vsel %vm506_vm5, %v1552_v59, %v1553_v23  ;;  %v1142_v2 = vmax.f32 %v1134_v35, 0.0  ;;  %v854_v3 = vmax.f32 %v846_v36, 0.0  ;;  %v1140_v8 = vmax.f32 %v1132_v55, 0.0 }
 0x150   : > { %v5038_v5 = vmul.f32 %v4718_v22, %v856_v63  ;;  %v849_v9 = vadd.f32 %v3925_v24, %v4940_v47  ;;  %v1135_v16 = vadd.f32 %v3961_v37, %v4945_v48  ;;  %v847_v23 = vadd.f32 %v4940_v47, %v816_v49 }
 0x151   : > { %v5043_v14 = vmul.f32 %v4711_v20, %v854_v3  ;;  %v1380_v28 = vrot.slane %v4979_v30, 1  ;;  %v5050_v31 = vmul.f32 %v4711_v20, %v1140_v8  ;;  %v5055_v36 = vmul.f32 %v4718_v22, %v1142_v2 }
 0x152   : > { %v857_v32 = vmax.f32 %v849_v9, 0.0  ;;  %v1175_v35 = vrot.slane %v5038_v5, 7  ;;  %v1143_v55 = vmax.f32 %v1135_v16, 0.0  ;;  %v855_v3 = vmax.f32 %v847_v23, 0.0 }
 0x153   : > { %v5896_v24 = vrot.slane %v5043_v14, 1  ;;  %v5895_v47 = vrot.slane %v5050_v31, 1  ;;  %v1133_v8 = vadd.f32 %v4945_v48, %v1102_v50  ;;  %v1197_v2 = vpack.c.bf16 %v4979_v30, %v4962_v11 }
 0x154   : > { %v5061_v49 = vmul.f32 %v4730_v26, %v857_v32  ;;  %v1173_v9 = vrot.slane %v5043_v14, 7  ;;  %v5086_v50 = vmul.f32 %v4730_v26, %v1143_v55  ;;  %v5089_v23 = vmul.f32 %v4714_v21, %v855_v3 }
 0x155   : > { %v1390_v63 = vsel %vm718_vm7, %v1382_v45, %v5896_v24  ;;  %v1772_v16 = vsel %vm718_vm7, %v1764_v53, %v5895_v47  ;;  %v4380_v45 = vld [vmem:[%s5883_s3 + $0x38] sm:$0xff]   ;;  %3966 = vmatprep.mubr.msk.bf16.mxu0 %vm543_vm4, %v1197_v2  ;;  %v1579_v0 = vpack.c.bf16 %v4982_v33, %v4965_v15  ;;  %v1183_v55 = vsel %vm506_vm5, %v1169_v12, %v1170_v54 }
 0x156   : > { %v5072_v4 = vmul.f32 %v4843_v17, %v1390_v63  ;;  %v1176_v32 = vrot.slane %v5061_v49, 7  ;;  %v5083_v48 = vmul.f32 %v4843_v17, %v1772_v16  ;;  %v1141_v63 = vmax.f32 %v1133_v8, 0.0  ;;  %3967 = vmatmul.mubr.msk.bf16.vlgmr.msra.gmra.mrb[8].mxu0 %vm543_vm4, %v1198_v44  ;;  %v4382_v44 = vld [vmem:[%s5883_s3 + $0x98] sm:$0xff]  }
 0x157   : > { %v1200_v16 = vpack.c.bf16 %v5061_v49, %v5038_v5  ;;  %v1555_v3 = vrot.slane %v5050_v31, 7  ;;  %v1558_v2 = vrot.slane %v5086_v50, 7  ;;  %v1174_v53 = vrot.slane %v5089_v23, 7  ;;  %3975 = vmatpush3.bf16.msra.mxu0 %v4886_v39  ;;  %4002 = vmatprep.mubr.msk.bf16.mxu1 %vm543_vm4, %v1579_v0  ;;  %v5122_v39 = vld [vmem:[%s5883_s3 + $0x50] sm:$0xff]  }
 0x158   : > { %v1557_v47 = vrot.slane %v5055_v36, 7  ;;  %v1149_v24 = vmul.f32 %v4714_v21, %v1141_v63  ;;  %v1199_v54 = vpack.c.bf16 %v5089_v23, %v5043_v14  ;;  %3976 = vmatprep.subr.bf16.mxu0 %v4380_v45  ;;  %v1582_v8 = vpack.c.bf16 %v5086_v50, %v5055_v36  ;;  %4003 = vmatmul.mubr.msk.bf16.vlgmr.msra.gmra.mrb[8].mxu1 %vm543_vm4, %v1580_v51 }
 0x159   : > { %v1184_v0 = vsel %vm506_vm5, %v1176_v32, %v1169_v12  ;;  %v1565_v63 = vsel %vm506_vm5, %v1551_v13, %v1552_v59  ;;  %v1566_v37 = vsel %vm506_vm5, %v1558_v2, %v1551_v13  ;;  %v1179_v27 = vsel %vm506_vm5, %v1173_v9, %v1174_v53  ;;  %4011 = vmatpush3.bf16.msra.mxu1 %v4892_v40  ;;  %v4385_v40 = vld [vmem:[%s5883_s3 + $0xb0] sm:$0xff]  }
 0x15a   : > { %v1767_v34 = vrot.slane %v5055_v36, 1  ;;  %v1556_v25 = vrot.slane %v1149_v24, 7  ;;  %3970 = vmatprep.mubr.msk.bf16.mxu0 %vm543_vm4, %v1199_v54  ;;  %v1581_v51 = vpack.c.bf16 %v1149_v24, %v5050_v31  ;;  %v1185_v12 = vmul.f32 %v4786_v52, %v1184_v0  ;;  %4012 = vmatprep.subr.bf16.mxu1 %v4382_v44 }
 0x15b   : > { %v1386_v60 = vrot.slane %v5061_v49, 1  ;;  %3977 = vmatpush3.bf16.msra.mxu0 %v4380_v45  ;;  %v1567_v59 = vmul.f32 %v4786_v52, %v1566_v37  ;;  %v1180_v13 = vsel %vm506_vm5, %v1172_v38, %v1173_v9  ;;  %v1562_v36 = vsel %vm506_vm5, %v1554_v46, %v1555_v3 }
 0x15c   : > { %v1384_v49 = vrot.slane %v5089_v23, 1  ;;  %4006 = vmatprep.mubr.msk.bf16.mxu1 %vm543_vm4, %v1581_v51  ;;  %v1193_v45 = vpack.c.bf16 %v1183_v55, %v1185_v12  ;;  %3986 = vmatprep.subr.bf16.mxu0 %v5122_v39  ;;  %v1189_v19 = vmul.f32 %v4786_v52, %v1180_v13  ;;  %v1561_v38 = vsel %vm506_vm5, %v1555_v3, %v1556_v25 }
 0x15d   : > { %v1575_v29 = vpack.c.bf16 %v1565_v63, %v1567_v59  ;;  %v1571_v37 = vmul.f32 %v4786_v52, %v1562_v36  ;;  %v1177_v46 = vsel %vm506_vm5, %v1175_v35, %v1176_v32  ;;  %v1178_v9 = vsel %vm506_vm5, %v1174_v53, %v1175_v35  ;;  %4013 = vmatpush3.bf16.msra.mxu1 %v4382_v44 }
 0x15e   : > { %v1766_v23 = vrot.slane %v1149_v24, 1  ;;  %3971 = vmatmul.mubr.msk.bf16.gmra.mrb[12].mxu0 %vm543_vm4, %v1200_v16  ;;  %v1195_v55 = vpack.c.bf16 %v1179_v27, %v1189_v19  ;;  %v1196_v54 = vpack.c.bf16 %v1177_v46, %v1178_v9  ;;  %v1559_v3 = vsel %vm506_vm5, %v1557_v47, %v1558_v2  ;;  %4022 = vmatprep.subr.bf16.mxu1 %v4385_v40 }
 0x15f   : > { %v1768_v0 = vrot.slane %v5086_v50, 1  ;;  %3978 = vmatprep.mubr.msk.bf16.mxu0 %vm543_vm4, %v1193_v45  ;;  %v1577_v63 = vpack.c.bf16 %v1561_v38, %v1571_v37  ;;  %v1560_v32 = vsel %vm506_vm5, %v1556_v25, %v1557_v47  ;;  %v1392_v27 = vsel %vm718_vm7, %v1380_v28, %v1381_v18 }
 0x160   : > { %v1578_v35 = vpack.c.bf16 %v1559_v3, %v1560_v32  ;;  %v5924_v24 = vrot.slane %v4962_v11, 1  ;;  %v5925_v53 = vrot.slane %v4959_v10, 1  ;;  %v5926_v25 = vrot.slane %v4982_v33, 1  ;;  %4007 = vmatmul.mubr.msk.bf16.gmra.mrb[12].mxu1 %vm543_vm4, %v1582_v8 }
 0x161   : > { %v5928_v16 = vrot.slane %v4965_v15, 1  ;;  %v5930_v44 = vrot.slane %v5043_v14, 1  ;;  %4014 = vmatprep.mubr.msk.bf16.mxu1 %vm543_vm4, %v1575_v29  ;;  %v1770_v12 = vsel %vm718_vm7, %v1766_v23, %v1767_v34  ;;  %v5931_v8 = vrot.slane %v5050_v31, 1  ;;  %v4386_v15 = vld [vmem:[%s5883_s3 + $0xb8] sm:$0xff]  }
 0x162   : > { %v1393_v50 = vsel %vm718_vm7, %v5924_v24, %v1380_v28  ;;  %v1774_v7 = vsel %vm718_vm7, %v5926_v25, %v5925_v53  ;;  %v5927_v47 = vmov %v5926_v25  ;;  %v5929_v28 = vrot.slane %v5038_v5, 1  ;;  %v4384_v5 = vld [vmem:[%s5883_s3 + $0x58] sm:$0xff]  }
 0x163   : > { %v1775_v18 = vsel %vm718_vm7, %v5928_v16, %v5927_v47  ;;  %v1403_v30 = vpack.c.bf16 %v1392_v27, %v1393_v50  ;;  %v1389_v51 = vsel %vm718_vm7, %v5930_v44, %v1384_v49  ;;  %v1771_v59 = vsel %vm718_vm7, %v5931_v8, %v1766_v23  ;;  %v5284_v23 = vld [vmem:[%s5886_s6] ss:$0 sm:$0xff] }
 0x164   : > { %v1785_v2 = vpack.c.bf16 %v1774_v7, %v1775_v18  ;;  %v1388_v10 = vsel %vm718_vm7, %v1384_v49, %v5929_v28  ;;  %v5932_v13 = vmov %v5929_v28  ;;  %v1787_v14 = vpack.c.bf16 %v1770_v12, %v1771_v59  ;;  %5939 = vst [vmem:[#allocation15_spill] sm:$0xff] %v5284_v23  ;;  %2609 = vrot.lane.b32.xlu0 %v5284_v23, %s4524_s13  ;;  %s406_s13 = sand.u32 1, %s4510_s20  }
 0x165   : > { %v1405_v33 = vpack.c.bf16 %v1388_v10, %v1389_v51  ;;  %v1387_v36 = vsel %vm718_vm7, %v5932_v13, %v1386_v60  ;;  %v5933_v45 = vmov %v5924_v24  ;;  %v1769_v19 = vsel %vm718_vm7, %v1767_v34, %v1768_v0  ;;  %2281 = vrot.lane.b32.xlu1 %v5284_v23, %s4523_s30  ;;  %s4526_s30 = smov 5   ;;  %s3522_s18 = sshll.u32 %s406_s13, 4 }
 0x166   : > { %v1394_v49 = vsel %vm718_vm7, %v1386_v60, %v5933_v45  ;;  %v5934_v38 = vmov %v5928_v16  ;;  %v5935_v11 = vpack.c.bf16 %v5001_v56, %v5025_v62  ;;  %v5936_v46 = vpack.c.bf16 %v5013_v58, %v5033_v1  ;;  %v1972_v56 = vpop.permute.xlu0 %1971  ;;  %s408_s23 = scalar_lea.vmem [#allocation8], %s3522_s18 }
 0x167   : > { %v1776_v31 = vsel %vm718_vm7, %v1768_v0, %v5934_v38  ;;  %v1402_v29 = vmul.f32 %v4843_v17, %v1394_v49  ;;  %v5937_v58 = vpack.c.bf16 %v5072_v4, %v5007_v57  ;;  %v5938_v62 = vpack.c.bf16 %v5083_v48, %v5021_v61  ;;  %v5299_v0 = vld [vmem:[%s5884_s4 + $0x3] ss:$0 sm:$0xff]  ;;  %s3430_s25 = sshll.u32 %s408_s23, 4  ;;  %s5831_s25 = int_to_ptr.vmem [resolvable:$true] %s3430_s25 }
 0x168   : > { %v1784_v37 = vmul.f32 %v4843_v17, %v1776_v31  ;;  %3979 = vmatmul.mubr.msk.bf16.vlgmr.msra.gmra.mrb[8].mxu0 %vm543_vm4, %v5935_v11  ;;  %4015 = vmatmul.mubr.msk.bf16.vlgmr.msra.gmra.mrb[8].mxu1 %vm543_vm4, %v5936_v46  ;;  %s4448_s16 = scalar_lea.vmem %s5831_s25, 256 }
 0x169   : > { %v1406_v60 = vpack.c.bf16 %v1402_v29, %v1387_v36  ;;  %3987 = vmatpush3.bf16.msra.mxu0 %v5122_v39  ;;  %3982 = vmatprep.mubr.msk.bf16.mxu0 %vm543_vm4, %v1195_v55  ;;  %v5267_v39 = vpop.permute.xlu1 %2064  ;;  %v5293_v55 = vld [vmem:[%s5884_s4 + $0x1] ss:$0 sm:$0xff]  ;;  %p4449_p10 = scmp.ne.s32.totalorder %s5831_s25, %s4448_s16 }
 0x16a   : > { %v1788_v34 = vpack.c.bf16 %v1784_v37, %v1769_v19  ;;  %3988 = vmatprep.subr.bf16.mxu0 %v4384_v5  ;;  %4018 = vmatprep.mubr.msk.bf16.mxu1 %vm543_vm4, %v1577_v63  ;;  %v1974_v1 = vpop.permute.xlu0 %1973 }
 0x16b   : > { %4023 = vmatpush3.bf16.msra.mxu1 %v4385_v40  ;;  %p4450_p0 = pnand %p4449_p10, %p5968_p12 }
 0x16c   : > { %4024 = vmatprep.subr.bf16.mxu1 %v4386_v15 }
 0x16d   : > { %3989 = vmatpush3.bf16.msra.mxu0 %v4384_v5  ;;  %v5274_v4 = vpop.permute.xlu1 %2066  ;;  %p4451_p7 = pneg %p4450_p0 }
 0x16e   : > { %4034 = vmatprep.subr.bf16.mxu0 %v1972_v56  ;;  %v5272_v57 = vpop.permute.xlu0 %2185 }
 0x16f   : > { %4025 = vmatpush3.bf16.msra.mxu1 %v4386_v15 }
 0x170   : > { %3983 = vmatmul.mubr.msk.bf16.gmra.mrb[12].mxu0 %vm543_vm4, %v1196_v54  ;;  %4019 = vmatmul.mubr.msk.bf16.gmra.mrb[12].mxu1 %vm543_vm4, %v1578_v35 }
 0x171   : > { %3990 = vmatprep.mubr.msk.bf16.mxu0 %vm543_vm4, %v1403_v30  ;;  %4026 = vmatprep.mubr.msk.bf16.mxu1 %vm543_vm4, %v1785_v2  ;;  %v5276_v48 = vpop.permute.xlu1 %2187 }
 0x172   : > { %v2325_v61 = vpop.permute.xlu0 %2324 }
 0x173   : > { %4070 = vmatprep.subr.bf16.mxu1 %v2325_v61 }
 0x175   : > { %v2327_v40 = vpop.permute.xlu1 %2326 }
 0x176   : > { %v5278_v9 = vpop.permute.xlu0 %2407 }
 0x178   : > { %3991 = vmatmul.mubr.msk.bf16.vlgmr.msra.gmra.mrb[8].mxu0 %vm543_vm4, %v5937_v58  ;;  %4027 = vmatmul.mubr.msk.bf16.vlgmr.msra.gmra.mrb[8].mxu1 %vm543_vm4, %v5938_v62 }
 0x179   : > { %3994 = vmatprep.mubr.msk.bf16.mxu0 %vm543_vm4, %v1405_v33  ;;  %4035 = vmatpush3.bf16.msra.mxu0 %v1972_v56 }
 0x17a   : > { %4030 = vmatprep.mubr.msk.bf16.mxu1 %vm543_vm4, %v1787_v14  ;;  %4036 = vmatprep.subr.bf16.mxu0 %v1974_v1 }
 0x17b   : > { %4071 = vmatpush3.bf16.msra.mxu1 %v2325_v61 }
 0x17c   : > { %4072 = vmatprep.subr.bf16.mxu1 %v2327_v40 }
 0x17d   : > { %4037 = vmatpush3.bf16.msra.mxu0 %v1974_v1 }
 0x17e   : > { %4046 = vmatprep.subr.bf16.mxu0 %v5267_v39 }
 0x17f   : > { %4073 = vmatpush3.bf16.msra.mxu1 %v2327_v40 }
 0x180   : > { %3995 = vmatmul.mubr.msk.bf16.gmra.mrb[12].mxu0 %vm543_vm4, %v1406_v60  ;;  %4031 = vmatmul.mubr.msk.bf16.gmra.mrb[12].mxu1 %vm543_vm4, %v1788_v34 }
 0x181   : > { %4082 = vmatprep.subr.bf16.mxu1 %v5278_v9 }
 0x24b   : > { %v3992_v54 = vpop.f32.mrb[8].mxu0  ;;  %v4028_v24 = vpop.f32.mrb[8].mxu1 }
 0x24c   : > { %v1512_v3 = vadd.f32 %v3992_v54, %v5293_v55  ;;  %v1465_v63 = vpop.f32.mrb[9].mxu0  ;;  %v1894_v25 = vadd.f32 %v4028_v24, %v5299_v0  ;;  %v1847_v47 = vpop.f32.mrb[9].mxu1 }
 0x24d   : > { %v1510_v32 = vadd.f32 %v5293_v55, %v1465_v63  ;;  %v3993_v27 = vpop.f32.mrb[10].mxu0  ;;  %v1892_v30 = vadd.f32 %v5299_v0, %v1847_v47  ;;  %v4029_v28 = vpop.f32.mrb[10].mxu1 }
 0x24e   : > { %v1520_v35 = vmax.f32 %v1512_v3, 0.0  ;;  %v1513_v50 = vadd.f32 %v3993_v27, %v5293_v55  ;;  %v1468_v53 = vpop.f32.mrb[11].mxu0  ;;  %v1902_v10 = vmax.f32 %v1894_v25, 0.0  ;;  %v1895_v51 = vadd.f32 %v4029_v28, %v5299_v0  ;;  %v1850_v12 = vpop.f32.mrb[11].mxu1 }
 0x24f   : > { %v1518_v7 = vmax.f32 %v1510_v32, 0.0  ;;  %v1511_v16 = vadd.f32 %v5293_v55, %v1468_v53  ;;  %v1900_v49 = vmax.f32 %v1892_v30, 0.0  ;;  %v1893_v27 = vadd.f32 %v5299_v0, %v1850_v12 }
 0x250   : > { %v5306_v18 = vmul.f32 %v4718_v22, %v1520_v35  ;;  %v1521_v2 = vmax.f32 %v1513_v50, 0.0  ;;  %v5319_v36 = vmul.f32 %v4718_v22, %v1902_v10  ;;  %v1903_v14 = vmax.f32 %v1895_v51, 0.0 }
 0x251   : > { %v5310_v44 = vmul.f32 %v4711_v20, %v1518_v7  ;;  %v1519_v33 = vmax.f32 %v1511_v16, 0.0  ;;  %v5357_v32 = vmul.f32 %v4711_v20, %v1900_v49 }
 0x252   : > { %v5314_v8 = vmul.f32 %v4730_v26, %v1521_v2  ;;  %v1931_v59 = vrot.slane %v5306_v18, 7  ;;  %v5901_v13 = vrot.slane %v5306_v18, 1  ;;  %v5330_v11 = vmul.f32 %v4730_v26, %v1903_v14 }
 0x253   : > { %v3996_v45 = vpop.f32.mrb[12].mxu0  ;;  %v1929_v29 = vrot.slane %v5310_v44, 7  ;;  %v5333_v60 = vmul.f32 %v4714_v21, %v1519_v33  ;;  %v2294_v15 = vrot.slane %v5319_v36, 7  ;;  %v5898_v46 = vrot.slane %v5319_v36, 1  ;;  %v4032_v62 = vpop.f32.mrb[12].mxu1 }
 0x254   : > { %v5903_v19 = vrot.slane %v5314_v8, 7  ;;  %v5324_v38 = vpack.c.bf16 %v5314_v8, %v5306_v18  ;;  %v2150_v31 = vrot.slane %v5314_v8, 1  ;;  %v1481_v5 = vpop.f32.mrb[13].mxu0  ;;  %v5902_v61 = vrot.slane %v5330_v11, 7  ;;  %v1863_v63 = vpop.f32.mrb[13].mxu1 }
 0x255   : > { %v3997_v34 = vpop.f32.mrb[14].mxu0  ;;  %v5352_v40 = vpack.c.bf16 %v5330_v11, %v5319_v36  ;;  %v2493_v54 = vrot.slane %v5330_v11, 1  ;;  %v1930_v3 = vrot.slane %v5333_v60, 7  ;;  %v1516_v35 = vadd.f32 %v3996_v45, %v5293_v55  ;;  %v4033_v50 = vpop.f32.mrb[14].mxu1 }
 0x256   : > { %v5341_v56 = vsel %vm506_vm5, %v1931_v59, %v5903_v19  ;;  %v5347_v58 = vsel %vm718_vm7, %v5901_v13, %v2150_v31  ;;  %v1484_v1 = vpop.f32.mrb[15].mxu0  ;;  %v1898_v24 = vadd.f32 %v4032_v62, %v5299_v0  ;;  %v5366_v53 = vsel %vm506_vm5, %v2294_v15, %v5902_v61  ;;  %v1866_v16 = vpop.f32.mrb[15].mxu1 }
 0x257   : > { %v5372_v25 = vsel %vm718_vm7, %v5898_v46, %v2493_v54  ;;  %v5378_v7 = vsel %vm506_vm5, %v1930_v3, %v1931_v59  ;;  %v1514_v47 = vadd.f32 %v5293_v55, %v1481_v5  ;;  %v1901_v2 = vmax.f32 %v1893_v27, 0.0  ;;  %v2410_v61 = vpop.permute.xlu1 %2409 }
 0x258   : > { %v1524_v28 = vmax.f32 %v1516_v35, 0.0  ;;  %v1906_v10 = vmax.f32 %v1898_v24, 0.0  ;;  %v1896_v33 = vadd.f32 %v5299_v0, %v1863_v63  ;;  %v1517_v12 = vadd.f32 %v3997_v34, %v5293_v55 }
 0x259   : > { %v1522_v51 = vmax.f32 %v1514_v47, 0.0  ;;  %v1899_v14 = vadd.f32 %v4033_v50, %v5299_v0  ;;  %v2292_v45 = vrot.slane %v5357_v32, 7  ;;  %v5388_v59 = vmul.f32 %v4714_v21, %v1901_v2 }
 0x25a   : > { %v5391_v49 = vmul.f32 %v4718_v22, %v1524_v28  ;;  %v1515_v5 = vadd.f32 %v5293_v55, %v1484_v1  ;;  %v1904_v27 = vmax.f32 %v1896_v33, 0.0  ;;  %v1525_v35 = vmax.f32 %v1517_v12, 0.0 }
 0x25b   : > { %v5395_v62 = vmul.f32 %v4711_v20, %v1522_v51  ;;  %v1907_v63 = vmax.f32 %v1899_v14, 0.0  ;;  %v2293_v50 = vrot.slane %v5388_v59, 7  ;;  %v5401_v47 = vmul.f32 %v4718_v22, %v1906_v10 }
 0x25c   : > { %v5412_v33 = vmul.f32 %v4711_v20, %v1904_v27  ;;  %v5415_v12 = vmul.f32 %v4730_v26, %v1525_v35  ;;  %v1523_v55 = vmax.f32 %v1515_v5, 0.0  ;;  %v5447_v5 = vpack.c.bf16 %v5333_v60, %v5310_v44 }
 0x25d   : > { %v5899_v1 = vrot.slane %v5395_v62, 1  ;;  %v5409_v51 = vsel %vm506_vm5, %v2293_v50, %v2294_v15  ;;  %v5418_v10 = vmul.f32 %v4730_v26, %v1907_v63  ;;  %v1897_v15 = vadd.f32 %v5299_v0, %v1866_v16 }
 0x25e   : > { %v2298_v27 = vrot.slane %v5401_v47, 7  ;;  %v5900_v63 = vrot.slane %v5412_v33, 1  ;;  %v1933_v2 = vrot.slane %v5395_v62, 7  ;;  %v2296_v14 = vrot.slane %v5412_v33, 7  ;;  %4038 = vmatprep.mubr.msk.bf16.mxu0 %vm543_vm4, %v5447_v5 }
 0x25f   : > { %v2158_v30 = vsel %vm718_vm7, %v2150_v31, %v5899_v1  ;;  %v1936_v46 = vrot.slane %v5415_v12, 7  ;;  %v5437_v31 = vmul.f32 %v4714_v21, %v1523_v55  ;;  %v2299_v1 = vrot.slane %v5418_v10, 7  ;;  %4039 = vmatmul.mubr.msk.bf16.vlgmr.msra.gmra.mrb[16].mxu0 %vm543_vm4, %v5324_v38 }
 0x260   : > { %v5430_v35 = vmul.f32 %v4843_v17, %v2158_v30  ;;  %v2501_v16 = vsel %vm718_vm7, %v2493_v54, %v5900_v63  ;;  %v1905_v30 = vmax.f32 %v1897_v15, 0.0  ;;  %v5456_v0 = vpack.c.bf16 %v5388_v59, %v5357_v32  ;;  %4047 = vmatpush3.bf16.msra.mxu0 %v5267_v39 }
 0x261   : > { %v5450_v34 = vmul.f32 %v4843_v17, %v2501_v16  ;;  %v1934_v55 = vrot.slane %v5437_v31, 7  ;;  %v5465_v54 = vpack.c.bf16 %v5437_v31, %v5395_v62  ;;  %v5469_v15 = vpack.c.bf16 %v5415_v12, %v5391_v49  ;;  %4048 = vmatprep.subr.bf16.mxu0 %v5274_v4 }
 0x262   : > { %v5459_v37 = vmul.f32 %v4714_v21, %v1905_v30  ;;  %v5473_v16 = vpack.c.bf16 %v5418_v10, %v5401_v47  ;;  %v2154_v30 = vrot.slane %v5415_v12, 1  ;;  %4074 = vmatprep.mubr.msk.bf16.mxu1 %vm543_vm4, %v5456_v0  ;;  %v1943_v24 = vsel %vm506_vm5, %v1929_v29, %v1930_v3 }
 0x263   : > { %v1944_v63 = vsel %vm506_vm5, %v1936_v46, %v1929_v29  ;;  %v2497_v12 = vrot.slane %v5418_v10, 1  ;;  %4075 = vmatmul.mubr.msk.bf16.vlgmr.msra.gmra.mrb[16].mxu1 %vm543_vm4, %v5352_v40  ;;  %v2152_v19 = vrot.slane %v5437_v31, 1  ;;  %4042 = vmatprep.mubr.msk.bf16.mxu0 %vm543_vm4, %v5465_v54  ;;  %v2306_v39 = vsel %vm506_vm5, %v2292_v45, %v2293_v50 }
 0x264   : > { %v2297_v13 = vrot.slane %v5459_v37, 7  ;;  %v5499_v28 = vpack.c.bf16 %v5459_v37, %v5412_v33  ;;  %v1945_v3 = vmul.f32 %v4786_v52, %v1944_v63  ;;  %v2307_v29 = vsel %vm506_vm5, %v2299_v1, %v2292_v45  ;;  %4083 = vmatpush3.bf16.msra.mxu1 %v5278_v9  ;;  %4049 = vmatpush3.bf16.msra.mxu0 %v5274_v4 }
 0x265   : > { %v1939_v10 = vsel %vm506_vm5, %v1933_v2, %v1934_v55  ;;  %v2495_v63 = vrot.slane %v5459_v37, 1  ;;  %v2308_v23 = vmul.f32 %v4786_v52, %v2307_v29  ;;  %v5940_v50 = vrot.slane %v5314_v8, 7  ;;  %4084 = vmatprep.subr.bf16.mxu1 %v2410_v61  ;;  %4058 = vmatprep.subr.bf16.mxu0 %v5272_v57 }
 0x266   : > { %4078 = vmatprep.mubr.msk.bf16.mxu1 %vm543_vm4, %v5499_v28  ;;  %v1953_v31 = vpack.c.bf16 %v1943_v24, %v1945_v3  ;;  %v2302_v26 = vsel %vm506_vm5, %v2296_v14, %v2297_v13  ;;  %v5941_v37 = vrot.slane %v5330_v11, 7  ;;  %v5942_v9 = vrot.slane %v5391_v49, 7  ;;  %v2519_v3 = vpop.permute.xlu0 %2518 }
 0x267   : > { %v1940_v21 = vsel %vm506_vm5, %v5940_v50, %v1933_v2  ;;  %v2316_v8 = vpack.c.bf16 %v2306_v39, %v2308_v23  ;;  %v2300_v11 = vsel %vm506_vm5, %v2298_v27, %v2299_v1  ;;  %v5944_v4 = vrot.slane %v5306_v18, 1  ;;  %4043 = vmatmul.mubr.msk.bf16.gmra.mrb[20].mxu0 %vm543_vm4, %v5469_v15 }
 0x268   : > { %v1949_v45 = vmul.f32 %v4786_v52, %v1940_v21  ;;  %v2303_v20 = vsel %vm506_vm5, %v5941_v37, %v2296_v14  ;;  %v1937_v24 = vsel %vm506_vm5, %v5942_v9, %v1936_v46  ;;  %v5943_v21 = vmov %v5942_v9  ;;  %4085 = vmatpush3.bf16.msra.mxu1 %v2410_v61 }
 0x269   : > { %v2312_v2 = vmul.f32 %v4786_v52, %v2303_v20  ;;  %v1938_v29 = vsel %vm506_vm5, %v1934_v55, %v5943_v21  ;;  %v2301_v46 = vsel %vm506_vm5, %v2297_v13, %v2298_v27  ;;  %v5945_v20 = vrot.slane %v5333_v60, 1  ;;  %4094 = vmatprep.subr.bf16.mxu1 %v2519_v3  ;;  %4050 = vmatprep.mubr.msk.bf16.mxu0 %vm543_vm4, %v1953_v31 }
 0x26a   : > { %v1955_v14 = vpack.c.bf16 %v1939_v10, %v1949_v45  ;;  %v1956_v50 = vpack.c.bf16 %v1937_v24, %v1938_v29  ;;  %v2319_v55 = vpack.c.bf16 %v2300_v11, %v2301_v46  ;;  %v5947_v1 = vrot.slane %v5310_v44, 1 }
 0x26b   : > { %v2160_v23 = vsel %vm718_vm7, %v5945_v20, %v5944_v4  ;;  %v2318_v39 = vpack.c.bf16 %v2302_v26, %v2312_v2  ;;  %v5946_v37 = vmov %v5945_v20  ;;  %v5948_v45 = vrot.slane %v5319_v36, 1  ;;  %4079 = vmatmul.mubr.msk.bf16.gmra.mrb[20].mxu1 %vm543_vm4, %v5473_v16 }
 0x26c   : > { %v2161_v10 = vsel %vm718_vm7, %v5947_v1, %v5946_v37  ;;  %v5949_v13 = vrot.slane %v5388_v59, 1  ;;  %v5951_v60 = vrot.slane %v5357_v32, 1  ;;  %v5952_v9 = vrot.slane %v5391_v49, 1  ;;  %4086 = vmatprep.mubr.msk.bf16.mxu1 %vm543_vm4, %v2316_v8  ;;  %v2521_v32 = vpop.permute.xlu1 %2520 }
 0x26d   : > { %v2171_v26 = vpack.c.bf16 %v2160_v23, %v2161_v10  ;;  %v5953_v2 = vrot.slane %v5395_v62, 1  ;;  %v5954_v21 = vrot.slane %v5401_v47, 1  ;;  %v5955_v46 = vrot.slane %v5412_v33, 1 }
 0x26e   : > { %v2503_v18 = vsel %vm718_vm7, %v5949_v13, %v5948_v45  ;;  %v5950_v61 = vmov %v5949_v13  ;;  %v2156_v36 = vsel %vm718_vm7, %v2152_v19, %v5952_v9  ;;  %v5956_v31 = vmov %v5952_v9 }
 0x26f   : > { %v2504_v27 = vsel %vm718_vm7, %v5951_v60, %v5950_v61  ;;  %v2157_v59 = vsel %vm718_vm7, %v5953_v2, %v2152_v19  ;;  %v2499_v29 = vsel %vm718_vm7, %v2495_v63, %v5954_v21  ;;  %v2500_v4 = vsel %vm718_vm7, %v5955_v46, %v2495_v63 }
 0x270   : > { %v2514_v24 = vpack.c.bf16 %v2503_v18, %v2504_v27  ;;  %v2173_v11 = vpack.c.bf16 %v2156_v36, %v2157_v59  ;;  %v2155_v62 = vsel %vm718_vm7, %v5956_v31, %v2154_v30  ;;  %v5957_v19 = vmov %v5947_v1 }
 0x271   : > { %v2162_v20 = vsel %vm718_vm7, %v2154_v30, %v5957_v19  ;;  %v2516_v23 = vpack.c.bf16 %v2499_v29, %v2500_v4  ;;  %v5958_v8 = vmov %v5954_v21  ;;  %v5959_v63 = vmov %v5951_v60 }
 0x272   : > { %v2170_v37 = vmul.f32 %v4843_v17, %v2162_v20  ;;  %v2498_v33 = vsel %vm718_vm7, %v5958_v8, %v2497_v12  ;;  %v2505_v49 = vsel %vm718_vm7, %v2497_v12, %v5959_v63  ;;  %v5960_v30 = vpack.c.bf16 %v5341_v56, %v5378_v7  ;;  %v4393_v12 = vld [vmem:[%s5887_s7 + $0x10] sm:$0xff]   ;;  %v4397_v63 = vld [vmem:[%s5889_s9] sm:$0xff]  }
 0x273   : > { %v2513_v1 = vmul.f32 %v4843_v17, %v2505_v49  ;;  %v5961_v47 = vpack.c.bf16 %v5366_v53, %v5409_v51  ;;  %v5962_v56 = vpack.c.bf16 %v5430_v35, %v5347_v58  ;;  %v4395_v53 = vld [vmem:[%s5887_s7] sm:$0xff]  }
 0x274   : > { %v2174_v10 = vpack.c.bf16 %v2170_v37, %v2155_v62  ;;  %4051 = vmatmul.mubr.msk.bf16.vlgmr.msra.gmra.mrb[16].mxu0 %vm543_vm4, %v5960_v30 }
 0x275   : > { %v2517_v44 = vpack.c.bf16 %v2513_v1, %v2498_v33  ;;  %4059 = vmatpush3.bf16.msra.mxu0 %v5272_v57  ;;  %4087 = vmatmul.mubr.msk.bf16.vlgmr.msra.gmra.mrb[16].mxu1 %vm543_vm4, %v5961_v47  ;;  %v4394_v57 = vld [vmem:[%s5887_s7 + $0x18] sm:$0xff]  }
 0x276   : > { %4054 = vmatprep.mubr.msk.bf16.mxu0 %vm543_vm4, %v1955_v14  ;;  %4090 = vmatprep.mubr.msk.bf16.mxu1 %vm543_vm4, %v2318_v39 }
 0x277   : > { %4060 = vmatprep.subr.bf16.mxu0 %v5276_v48  ;;  %4095 = vmatpush3.bf16.msra.mxu1 %v2519_v3 }
 0x278   : > { %4096 = vmatprep.subr.bf16.mxu1 %v2521_v32 }
 0x279   : > { %4061 = vmatpush3.bf16.msra.mxu0 %v5276_v48  ;;  %v5963_v48 = vpack.c.bf16 %v5450_v34, %v5372_v25 }
 0x27a   : > { %4106 = vmatprep.subr.bf16.mxu0 %v4393_v12 }
 0x27b   : > { %4097 = vmatpush3.bf16.msra.mxu1 %v2521_v32 }
 0x27c   : > { %4055 = vmatmul.mubr.msk.bf16.gmra.mrb[20].mxu0 %vm543_vm4, %v1956_v50  ;;  %4130 = vmatprep.subr.bf16.mxu1 %v4898_v41 }
 0x27d   : > { %4091 = vmatmul.mubr.msk.bf16.gmra.mrb[20].mxu1 %vm543_vm4, %v2319_v55  ;;  %4062 = vmatprep.mubr.msk.bf16.mxu0 %vm543_vm4, %v2171_v26 }
 0x27e   : > { %4098 = vmatprep.mubr.msk.bf16.mxu1 %vm543_vm4, %v2514_v24 }
 0x284   : > { %4063 = vmatmul.mubr.msk.bf16.vlgmr.msra.gmra.mrb[16].mxu0 %vm543_vm4, %v5962_v56 }
 0x285   : > { %4099 = vmatmul.mubr.msk.bf16.vlgmr.msra.gmra.mrb[16].mxu1 %vm543_vm4, %v5963_v48  ;;  %4107 = vmatpush3.bf16.msra.mxu0 %v4393_v12 }
 0x286   : > { %4066 = vmatprep.mubr.msk.bf16.mxu0 %vm543_vm4, %v2173_v11  ;;  %4102 = vmatprep.mubr.msk.bf16.mxu1 %vm543_vm4, %v2516_v23 }
 0x287   : > { %4108 = vmatprep.subr.bf16.mxu0 %v4394_v57  ;;  %4131 = vmatpush3.bf16.msra.mxu1 %v4898_v41  ;;  %v4396_v41 = vld [vmem:[%s5887_s7 + $0x8] sm:$0xff]  }
 0x288   : > { %4132 = vmatprep.subr.bf16.mxu1 %v4910_v43 }
 0x289   : > { %4109 = vmatpush3.bf16.msra.mxu0 %v4394_v57 }
 0x28a   : > { %4118 = vmatprep.subr.bf16.mxu0 %v4395_v53 }
 0x28b   : > { %4133 = vmatpush3.bf16.msra.mxu1 %v4910_v43 }
 0x28c   : > { %4067 = vmatmul.mubr.msk.bf16.gmra.mrb[20].mxu0 %vm543_vm4, %v2174_v10  ;;  %4142 = vmatprep.subr.bf16.mxu1 %v4903_v42  ;;  %v2610_v42 = vpop.permute.xlu0 %2609  ;;  %v3701_v10 = vld [vmem:[%s5888_s8] ss:$0 sm:$0xff] }
 0x28d   : > { %4103 = vmatmul.mubr.msk.bf16.gmra.mrb[20].mxu1 %vm543_vm4, %v2517_v44  ;;  %4110 = vmatprep.mubr.msk.bf16.mxu0 %vm543_vm4, %v5456_v0 }
 0x294   : > { %4111 = vmatmul.mubr.msk.bf16.vlgmr.msra.gmra.mrb[24].mxu0 %vm543_vm4, %v5352_v40  ;;  %v2620_v40 = vstv %s474_s15  ;;  %s5836_s15 = scalar_lea.hbm %s5891_s11, %s3727_s26 }
 0x295   : > { %4119 = vmatpush3.bf16.msra.mxu0 %v4395_v53  ;;  %4114 = vmatprep.mubr.msk.bf16.mxu0 %vm543_vm4, %v5499_v28 }
 0x296   : > { %4120 = vmatprep.subr.bf16.mxu0 %v4396_v41 }
 0x299   : > { %4121 = vmatpush3.bf16.msra.mxu0 %v4396_v41 }
 0x29a   : > { %4166 = vmatprep.subr.bf16.mxu0 %v4397_v63 }
 0x29c   : > { %4115 = vmatmul.mubr.msk.bf16.gmra.mrb[28].mxu0 %vm543_vm4, %v5473_v16 }
 0x29d   : > { %4122 = vmatprep.mubr.msk.bf16.mxu0 %vm543_vm4, %v5447_v5 }
 0x2a4   : > { %4123 = vmatmul.mubr.msk.bf16.vlgmr.msra.gmra.mrb[24].mxu0 %vm543_vm4, %v5324_v38 }
 0x2a5   : > { %4126 = vmatprep.mubr.msk.bf16.mxu0 %vm543_vm4, %v5465_v54  ;;  %4167 = vmatpush3.bf16.msra.mxu0 %v4397_v63 }
 0x2ac   : > { %4127 = vmatmul.mubr.msk.bf16.gmra.mrb[28].mxu0 %vm543_vm4, %v5469_v15 }
 0x357   : > { %v5674_v43 = vpop.f32.mrb[16].mxu0 }
 0x358   : > { %v4100_v58 = vpop.f32.mrb[16].mxu1  ;;  %v5676_v25 = vpop.f32.mrb[17].mxu0 }
 0x359   : > { %v2614_v7 = vadd.f32 %v4100_v58, %v2610_v42  ;;  %v2570_v34 = vpop.f32.mrb[17].mxu1  ;;  %v5678_v28 = vpop.f32.mrb[18].mxu0 }
 0x35a   : > { %v2612_v51 = vadd.f32 %v2610_v42, %v2570_v34  ;;  %v4101_v38 = vpop.f32.mrb[18].mxu1  ;;  %v5680_v35 = vpop.f32.mrb[19].mxu0  ;;  %v5964_v34 = vld [vmem:[#allocation12_spill] sm:$0xff] }
 0x35b   : > { %v2623_v0 = vmul.f32 %v2620_v40, %v2614_v7  ;;  %v2615_v5 = vadd.f32 %v4101_v38, %v2610_v42  ;;  %v2573_v54 = vpop.f32.mrb[19].mxu1 }
 0x35c   : > { %v2621_v15 = vmul.f32 %v2620_v40, %v2612_v51  ;;  %v2613_v14 = vadd.f32 %v2610_v42, %v2573_v54 }
 0x35d   : > { %v2633_v16 = vmul.f32 1.442695, %v2623_v0  ;;  %v2624_v3 = vmul.f32 %v2620_v40, %v2615_v5  ;;  %v5965_v5 = vld [vmem:[#allocation14_spill] sm:$0xff] }
 0x35e   : > { %v2629_v50 = vmul.f32 1.442695, %v2621_v15  ;;  %v2622_v60 = vmul.f32 %v2620_v40, %v2613_v14  ;;  %v5966_v14 = vld [vmem:[#allocation13_spill] sm:$0xff] }
 0x35f   : > { %4398 = vpow2.f32 %v2633_v16  ;;  %v5682_v39 = vpop.f32.mrb[20].mxu0  ;;  %v2635_v61 = vmul.f32 1.442695, %v2624_v3 }
 0x360   : > { %v4104_v55 = vpop.f32.mrb[20].mxu1  ;;  %v5684_v45 = vpop.f32.mrb[21].mxu0  ;;  %4400 = vpow2.f32 %v2629_v50  ;;  %v2631_v11 = vmul.f32 1.442695, %v2622_v60 }
 0x361   : > { %v2618_v13 = vadd.f32 %v4104_v55, %v2610_v42  ;;  %v2586_v18 = vpop.f32.mrb[21].mxu1  ;;  %v5686_v26 = vpop.f32.mrb[22].mxu0  ;;  %4402 = vpow2.f32 %v2635_v61 }
 0x362   : > { %v2616_v27 = vadd.f32 %v2610_v42, %v2586_v18  ;;  %v4105_v9 = vpop.f32.mrb[22].mxu1  ;;  %v5688_v36 = vpop.f32.mrb[23].mxu0 }
 0x363   : > { %v2627_v24 = vmul.f32 %v2620_v40, %v2618_v13  ;;  %v2619_v2 = vadd.f32 %v4105_v9, %v2610_v42  ;;  %v2589_v59 = vpop.f32.mrb[23].mxu1 }
 0x364   : > { %v2625_v21 = vmul.f32 %v2620_v40, %v2616_v27  ;;  %v2617_v31 = vadd.f32 %v2610_v42, %v2589_v59 }
 0x365   : > { %v2641_v29 = vmul.f32 1.442695, %v2627_v24  ;;  %v2628_v4 = vmul.f32 %v2620_v40, %v2619_v2 }
 0x366   : > { %v2637_v46 = vmul.f32 1.442695, %v2625_v21  ;;  %v2626_v20 = vmul.f32 %v2620_v40, %v2617_v31 }
 0x367   : > { %4404 = vpow2.f32 %v2641_v29  ;;  %v2643_v19 = vmul.f32 1.442695, %v2628_v4 }
 0x368   : > { %4406 = vpow2.f32 %v2631_v11  ;;  %v2639_v37 = vmul.f32 1.442695, %v2626_v20 }
 0x369   : > { %v4399_v62 = vpop.eup %4398  ;;  %4408 = vpow2.f32 %v2637_v46 }
 0x36a   : > { %3270 = vrot.lane.b32.xlu0 %v4399_v62, %s4525_s17  ;;  %v4401_v23 = vpop.eup %4400  ;;  %4410 = vpow2.f32 %v2643_v19 }
 0x36b   : > { %v4403_v8 = vpop.eup %4402  ;;  %4412 = vpow2.f32 %v2639_v37 }
 0x36e   : > { %3266 = vrot.lane.b32.xlu0 %v4401_v23, %s4525_s17 }
 0x371   : > { %v4405_v33 = vpop.eup %4404 }
 0x372   : > { %3272 = vrot.lane.b32.xlu0 %v4403_v8, %s4525_s17  ;;  %3278 = vrot.lane.b32.xlu1 %v4405_v33, %s4525_s17  ;;  %v4407_v49 = vpop.eup %4406 }
 0x373   : > { %v4409_v1 = vpop.eup %4408 }
 0x374   : > { %v4411_v32 = vpop.eup %4410 }
 0x375   : > { %v4413_v7 = vpop.eup %4412 }
 0x376   : > { %3268 = vrot.lane.b32.xlu0 %v4407_v49, %s4525_s17  ;;  %3274 = vrot.lane.b32.xlu1 %v4409_v1, %s4525_s17 }
 0x377   : > { %v4124_v44 = vpop.f32.mrb[24].mxu0 }
 0x378   : > { %v2817_v30 = vadd.f32 %v4124_v44, %v3701_v10  ;;  %v2777_v47 = vpop.f32.mrb[25].mxu0 }
 0x379   : > { %v2815_v12 = vadd.f32 %v3701_v10, %v2777_v47  ;;  %v4125_v57 = vpop.f32.mrb[26].mxu0 }
 0x37a   : > { %v2825_v56 = vmax.f32 %v2817_v30, 0.0  ;;  %3280 = vrot.lane.b32.xlu1 %v4411_v32, %s4525_s17  ;;  %v2818_v48 = vadd.f32 %v4125_v57, %v3701_v10  ;;  %v2780_v53 = vpop.f32.mrb[27].mxu0  ;;  %v4415_v30 = vld [vmem:[%s5885_s5 + $0x8] sm:$0xff]  }
 0x37b   : > { %v2823_v41 = vmax.f32 %v2815_v12, 0.0  ;;  %v2816_v42 = vadd.f32 %v3701_v10, %v2780_v53 }
 0x37c   : > { %v2833_v58 = vmul.f32 %v4718_v22, %v2825_v56  ;;  %v2826_v40 = vmax.f32 %v2818_v48, 0.0 }
 0x37d   : > { %v5705_v51 = vmul.f32 %v5964_v34, %v2823_v41  ;;  %v2824_v38 = vmax.f32 %v2816_v42, 0.0 }
 0x37e   : > { %v2841_v0 = vrot.slane %v2833_v58, 7  ;;  %v2834_v54 = vmul.f32 %v5965_v5, %v2826_v40  ;;  %3276 = vrot.lane.b32.xlu1 %v4413_v7, %s4525_s17  ;;  %v3031_v15 = vrot.slane %v2833_v58, 1  ;;  %s5839_s17 = scalar_lea.sflag [#allocation4], %s406_s13 }
 0x37f   : > { %v2839_v16 = vrot.slane %v5705_v51, 7  ;;  %v3029_v3 = vrot.slane %v5705_v51, 1  ;;  %v2832_v50 = vmul.f32 %v5966_v14, %v2824_v38  ;;  %v4128_v55 = vpop.f32.mrb[28].mxu0 }
 0x380   : > { %v2842_v13 = vrot.slane %v2834_v54, 7  ;;  %v2868_v18 = vpack.c.bf16 %v2834_v54, %v2833_v58  ;;  %v3032_v61 = vrot.slane %v2834_v54, 1  ;;  %v2821_v60 = vadd.f32 %v4128_v55, %v3701_v10  ;;  %v2793_v27 = vpop.f32.mrb[29].mxu0 }
 0x381   : > { %v2840_v9 = vrot.slane %v2832_v50, 7  ;;  %v3030_v24 = vrot.slane %v2832_v50, 1  ;;  %v2819_v2 = vadd.f32 %v3701_v10, %v2793_v27  ;;  %v4129_v59 = vpop.f32.mrb[30].mxu0  ;;  %v2867_v21 = vpack.c.bf16 %v2832_v50, %v5705_v51 }
 0x382   : > { %v2851_v29 = vsel %vm506_vm5, %v2841_v0, %v2842_v13  ;;  %v5717_v11 = vsel %vm718_vm7, %v3031_v15, %v3032_v61  ;;  %v2829_v46 = vmax.f32 %v2821_v60, 0.0  ;;  %v2822_v4 = vadd.f32 %v4129_v59, %v3701_v10  ;;  %v2796_v31 = vpop.f32.mrb[31].mxu0 }
 0x383   : > { %v2852_v62 = vsel %vm506_vm5, %v2840_v9, %v2841_v0  ;;  %v2827_v19 = vmax.f32 %v2819_v2, 0.0  ;;  %v2820_v20 = vadd.f32 %v3701_v10, %v2796_v31  ;;  %4134 = vmatprep.mubr.msk.bf16.mxu1 %vm543_vm4, %v2867_v21  ;;  %v2853_v23 = vsel %vm506_vm5, %v2839_v16, %v2840_v9  ;;  %v4414_v10 = vld [vmem:[%s5885_s5] sm:$0xff]  }
 0x384   : > { %v2864_v37 = vpack.c.bf16 %v2851_v29, %v2852_v62  ;;  %v2837_v8 = vmul.f32 %v4718_v22, %v2829_v46  ;;  %v2830_v33 = vmax.f32 %v2822_v4, 0.0  ;;  %4135 = vmatmul.mubr.msk.bf16.vlgmr.msra.gmra.mrb[24].mxu1 %vm543_vm4, %v2868_v18  ;;  %v3042_v63 = vsel %vm718_vm7, %v3030_v24, %v3031_v15  ;;  %v4417_v29 = vld [vmem:[%s5885_s5 + $0x28] sm:$0xff]  }
 0x385   : > { %v2835_v49 = vmul.f32 %v5964_v34, %v2827_v19  ;;  %v2828_v1 = vmax.f32 %v2820_v20, 0.0  ;;  %4143 = vmatpush3.bf16.msra.mxu1 %v4414_v10  ;;  %v3043_v44 = vsel %vm718_vm7, %v3029_v3, %v3030_v24 }
 0x386   : > { %v2838_v22 = vmul.f32 %v5965_v5, %v2830_v33  ;;  %4144 = vmatprep.subr.bf16.mxu1 %v4415_v30  ;;  %v3053_v47 = vpack.c.bf16 %v3042_v63, %v3043_v44  ;;  %v2845_v32 = vrot.slane %v2837_v8, 7  ;;  %v3035_v48 = vrot.slane %v2837_v8, 1  ;;  %v4416_v5 = vld [vmem:[%s5885_s5 + $0x20] sm:$0xff]  }
 0x387   : > { %v2843_v12 = vrot.slane %v2835_v49, 7  ;;  %v3033_v57 = vrot.slane %v2835_v49, 1  ;;  %v2836_v56 = vmul.f32 %v5966_v14, %v2828_v1 }
 0x388   : > { %v2846_v53 = vrot.slane %v2838_v22, 7  ;;  %v3036_v41 = vrot.slane %v2838_v22, 1  ;;  %v2870_v42 = vpack.c.bf16 %v2838_v22, %v2837_v8 }
 0x389   : > { %v3040_v58 = vsel %vm718_vm7, %v3032_v61, %v3033_v57  ;;  %v2844_v40 = vrot.slane %v2836_v56, 7  ;;  %v3034_v7 = vrot.slane %v2836_v56, 1  ;;  %v2869_v34 = vpack.c.bf16 %v2836_v56, %v2835_v49  ;;  %4145 = vmatpush3.bf16.msra.mxu1 %v4415_v30 }
 0x38a   : > { %v3048_v38 = vmul.f32 %v4843_v17, %v3040_v58  ;;  %v2854_v0 = vsel %vm506_vm5, %v2846_v53, %v2839_v16  ;;  %4154 = vmatprep.subr.bf16.mxu1 %v4416_v5  ;;  %v2850_v54 = vsel %vm506_vm5, %v2842_v13, %v2843_v12  ;;  %v2847_v15 = vsel %vm506_vm5, %v2845_v32, %v2846_v53 }
 0x38b   : > { %4138 = vmatprep.mubr.msk.bf16.mxu1 %vm543_vm4, %v2869_v34  ;;  %v2855_v14 = vmul.f32 %v4786_v52, %v2854_v0  ;;  %v2849_v50 = vsel %vm506_vm5, %v2843_v12, %v2844_v40  ;;  %v2859_v16 = vmul.f32 %v4786_v52, %v2850_v54  ;;  %v2848_v55 = vsel %vm506_vm5, %v2844_v40, %v2845_v32 }
 0x38c   : > { %v3054_v18 = vpack.c.bf16 %v3048_v38, %v5717_v11  ;;  %4139 = vmatmul.mubr.msk.bf16.gmra.mrb[28].mxu1 %vm543_vm4, %v2870_v42  ;;  %v2866_v13 = vpack.c.bf16 %v2847_v15, %v2848_v55  ;;  %v3038_v61 = vsel %vm718_vm7, %v3034_v7, %v3035_v48  ;;  %v3039_v60 = vsel %vm718_vm7, %v3033_v57, %v3034_v7 }
 0x38d   : > { %v2863_v27 = vpack.c.bf16 %v2853_v23, %v2855_v14  ;;  %v2865_v9 = vpack.c.bf16 %v2849_v50, %v2859_v16  ;;  %v3055_v24 = vpack.c.bf16 %v3038_v61, %v3039_v60  ;;  %v3037_v52 = vsel %vm718_vm7, %v3035_v48, %v3036_v41  ;;  %v2282_v60 = vpop.permute.xlu1 %2281 }
 0x38e   : > { %v3044_v2 = vsel %vm718_vm7, %v3036_v41, %v3029_v3  ;;  %v3714_v41 = vld [vmem:[#allocation2] ss:$0 sm:$0xff] }
 0x38f   : > { %4146 = vmatprep.mubr.msk.bf16.mxu1 %vm543_vm4, %v2863_v27  ;;  %v3052_v59 = vmul.f32 %v4843_v17, %v3044_v2  ;;  %v5967_v17 = vld [vmem:[#allocation15_spill] sm:$0xff] }
 0x391   : > { %v3056_v21 = vpack.c.bf16 %v3052_v59, %v3037_v52 }
 0x394   : > { %4147 = vmatmul.mubr.msk.bf16.vlgmr.msra.gmra.mrb[24].mxu1 %vm543_vm4, %v2864_v37 }
 0x395   : > { %4155 = vmatpush3.bf16.msra.mxu1 %v4416_v5  ;;  %4150 = vmatprep.mubr.msk.bf16.mxu1 %vm543_vm4, %v2865_v9 }
 0x396   : > { %4156 = vmatprep.subr.bf16.mxu1 %v4417_v29 }
 0x399   : > { %4157 = vmatpush3.bf16.msra.mxu1 %v4417_v29  ;;  %v2284_v29 = vadd.f32 %v2282_v60, %v5676_v25 }
 0x39c   : > { %4151 = vmatmul.mubr.msk.bf16.gmra.mrb[28].mxu1 %vm543_vm4, %v2866_v13 }
 0x39d   : > { %4158 = vmatprep.mubr.msk.bf16.mxu1 %vm543_vm4, %v3053_v47 }
 0x3a4   : > { %4159 = vmatmul.mubr.msk.bf16.vlgmr.msra.gmra.mrb[24].mxu1 %vm543_vm4, %v3054_v18 }
 0x3a5   : > { %4162 = vmatprep.mubr.msk.bf16.mxu1 %vm543_vm4, %v3055_v24 }
 0x3ac   : > { %4163 = vmatmul.mubr.msk.bf16.gmra.mrb[28].mxu1 %vm543_vm4, %v3056_v21 }
 0x3dc   : > { %v3271_v61 = vpop.permute.xlu0 %3270 }
 0x3e0   : > { %v3267_v27 = vpop.permute.xlu0 %3266 }
 0x3e4   : > { %v3279_v9 = vpop.permute.xlu1 %3278  ;;  %v3273_v24 = vpop.permute.xlu0 %3272 }
 0x3e8   : > { %v3275_v52 = vpop.permute.xlu1 %3274  ;;  %v3269_v2 = vpop.permute.xlu0 %3268 }
 0x3ec   : > { %v3281_v59 = vpop.permute.xlu1 %3280 }
 0x477   : > { %v4160_v6 = vpop.f32.mrb[24].mxu1 }
 0x478   : > { %v3147_v51 = vadd.f32 %v4160_v6, %v5967_v17  ;;  %v3105_v3 = vpop.f32.mrb[25].mxu1  ;;  %v3323_v6 = vsel %vm3322_vm10, %v2284_v29, %v3267_v27 }
 0x479   : > { %v3145_v11 = vadd.f32 %v5967_v17, %v3105_v3  ;;  %v4161_v46 = vpop.f32.mrb[26].mxu1 }
 0x47a   : > { %v3148_v4 = vadd.f32 %v4161_v46, %v5967_v17  ;;  %v3108_v31 = vpop.f32.mrb[27].mxu1  ;;  %v3155_v19 = vmax.f32 %v3147_v51, 0.0 }
 0x47b   : > { %v3146_v62 = vadd.f32 %v5967_v17, %v3108_v31  ;;  %v3153_v23 = vmax.f32 %v3145_v11, 0.0  ;;  %v2285_v11 = vadd.f32 %v2282_v60, %v5680_v35  ;;  %v2287_v35 = vadd.f32 %v5678_v28, %v2282_v60 }
 0x47c   : > { %v3156_v20 = vmax.f32 %v3148_v4, 0.0  ;;  %v2286_v4 = vadd.f32 %v5674_v43, %v2282_v60  ;;  %v2290_v28 = vadd.f32 %v5682_v39, %v2282_v60 }
 0x47d   : > { %v3154_v37 = vmax.f32 %v3146_v62, 0.0  ;;  %v3324_v31 = vsel %vm3322_vm10, %v2285_v11, %v3269_v2 }
 0x47e   : > { %v3164_v8 = vpack.c.bf16 %v3156_v20, %v3155_v19  ;;  %v2288_v20 = vadd.f32 %v2282_v60, %v5684_v45 }
 0x47f   : > { %v3163_v33 = vpack.c.bf16 %v3154_v37, %v3153_v23  ;;  %v4164_v63 = vpop.f32.mrb[28].mxu1  ;;  %v3325_v23 = vsel %vm3322_vm10, %v2286_v4, %v3271_v61 }
 0x480   : > { %v3151_v49 = vadd.f32 %v4164_v63, %v5967_v17  ;;  %v3121_v1 = vpop.f32.mrb[29].mxu1 }
 0x481   : > { %v3149_v10 = vadd.f32 %v5967_v17, %v3121_v1  ;;  %v4165_v44 = vpop.f32.mrb[30].mxu1  ;;  %4168 = vmatprep.mubr.msk.bf16.mxu0 %vm3180_vm9, %v3163_v33  ;;  %v3327_v33 = vsel %vm3322_vm10, %v2288_v20, %v3275_v52  ;;  %v2289_v1 = vadd.f32 %v2282_v60, %v5688_v36  ;;  %v3329_v36 = vsel %vm3322_vm10, %v2290_v28, %v3279_v9 }
 0x482   : > { %v3152_v22 = vadd.f32 %v4165_v44, %v5967_v17  ;;  %v3124_v30 = vpop.f32.mrb[31].mxu1  ;;  %4169 = vmatmul.mubr.msk.bf16.vlgmr.msra.gmra.mrb[32].mxu0 %vm3180_vm9, %v3164_v8  ;;  %v3159_v32 = vmax.f32 %v3151_v49, 0.0 }
 0x483   : > { %v3150_v47 = vadd.f32 %v5967_v17, %v3124_v30  ;;  %v3157_v57 = vmax.f32 %v3149_v10, 0.0  ;;  %v3277_v17 = vpop.permute.xlu1 %3276  ;;  %v3326_v10 = vsel %vm3322_vm10, %v2287_v35, %v3273_v24 }
 0x484   : > { %v3160_v12 = vmax.f32 %v3152_v22, 0.0  ;;  %v3328_v30 = vsel %vm3322_vm10, %v2289_v1, %v3277_v17 }
 0x485   : > { %v3158_v56 = vmax.f32 %v3150_v47, 0.0 }
 0x486   : > { %v3166_v48 = vpack.c.bf16 %v3160_v12, %v3159_v32 }
 0x487   : > { %v3165_v53 = vpack.c.bf16 %v3158_v56, %v3157_v57 }
 0x489   : > { %4172 = vmatprep.mubr.msk.bf16.mxu0 %vm3180_vm9, %v3165_v53 }
 0x48a   : > { %4173 = vmatmul.mubr.msk.bf16.gmra.mrb[36].mxu0 %vm3180_vm9, %v3166_v48  ;;  %v2291_v48 = vadd.f32 %v5686_v26, %v2282_v60 }
 0x48c   : > { %v3330_v53 = vsel %vm3322_vm10, %v2291_v48, %v3281_v59 }
 0x555   : > { %v4170_v42 = vpop.f32.mrb[32].mxu0 }
 0x556   : > { %v3236_v58 = vadd.f32 %v4170_v42, %v3714_v41  ;;  %v3227_v40 = vpop.f32.mrb[33].mxu0 }
 0x557   : > { %v4171_v7 = vpop.f32.mrb[34].mxu0  ;;  %v3228_v38 = vadd.f32 %v3714_v41, %v3227_v40 }
 0x558   : > { %3302 = vrot.lane.b32.xlu0 %v3236_v58, %s4526_s30  ;;  %v3230_v34 = vpop.f32.mrb[35].mxu0  ;;  %v3239_v16 = vadd.f32 %v4171_v7, %v3714_v41 }
 0x559   : > { %v3231_v5 = vadd.f32 %v3714_v41, %v3230_v34 }
 0x55c   : > { %3298 = vrot.lane.b32.xlu0 %v3228_v38, %s4526_s30 }
 0x55d   : > { %v4174_v0 = vpop.f32.mrb[36].mxu0 }
 0x55e   : > { %v3252_v54 = vadd.f32 %v4174_v0, %v3714_v41  ;;  %v3243_v15 = vpop.f32.mrb[37].mxu0 }
 0x55f   : > { %v4175_v14 = vpop.f32.mrb[38].mxu0  ;;  %v3244_v55 = vadd.f32 %v3714_v41, %v3243_v15 }
 0x560   : > { %3300 = vrot.lane.b32.xlu0 %v3231_v5, %s4526_s30  ;;  %3310 = vrot.lane.b32.xlu1 %v3252_v54, %s4526_s30  ;;  %v3246_v50 = vpop.f32.mrb[39].mxu0  ;;  %v3255_v13 = vadd.f32 %v4175_v14, %v3714_v41 }
 0x561   : > { %v3247_v18 = vadd.f32 %v3714_v41, %v3246_v50 }
 0x564   : > { %3304 = vrot.lane.b32.xlu0 %v3239_v16, %s4526_s30  ;;  %3306 = vrot.lane.b32.xlu1 %v3244_v55, %s4526_s30 }
 0x568   : > { %3308 = vrot.lane.b32.xlu1 %v3247_v18, %s4526_s30 }
 0x56c   : > { %3312 = vrot.lane.b32.xlu1 %v3255_v13, %s4526_s30  ;;  %s4452_s30 = sshll.u32 %s4527_s10, 4  ;;  %s4453_s30 = int_to_ptr.vmem [resolvable:$false] %s4452_s30 }
 0x56d   : > { %s4454_s18 = scalar_lea.vmem %s4453_s30, 512  ;;  %p4455_p8 = scmp.lt.s32.totalorder %s5831_s25, %s4453_s30 }
 0x56e   : > { %p4456_p11 = scmp.lt.s32.totalorder %s4454_s18, %s4448_s16 }
 0x570   : > { %p4457_p13 = por %p4456_p11, %p4455_p8 }
 0x572   : > { %p4458_p1 = pnand %p4457_p13, %p4451_p7 }
 0x5ca   : > { %v3303_v21 = vpop.permute.xlu0 %3302 }
 0x5cb   : > { %v3334_v8 = vsel %vm3331_vm11, %v3325_v23, %v3303_v21 }
 0x5cc   : > { %v3343_v45 = vsel %vm3340_vm12, %v3334_v8, 0.0 }
 0x5ce   : > { %v3299_v51 = vpop.permute.xlu0 %3298 }
 0x5cf   : > { %v3332_v3 = vsel %vm3331_vm11, %v3323_v6, %v3299_v51 }
 0x5d0   : > { %v3341_v46 = vsel %vm3340_vm12, %v3332_v3, 0.0 }
 0x5d1   : > { %3349 = vxpose.xlu0.b32.start [1/4] (short) (narrow) %v3341_v46, 8 }
 0x5d2   : > { %v3301_v62 = vpop.permute.xlu0 %3300  ;;  %v3311_v25 = vpop.permute.xlu1 %3310 }
 0x5d3   : > { %v3333_v19 = vsel %vm3331_vm11, %v3324_v31, %v3301_v62  ;;  %v3338_v56 = vsel %vm3331_vm11, %v3329_v36, %v3311_v25 }
 0x5d4   : > { %v3342_v37 = vsel %vm3340_vm12, %v3333_v19, 0.0  ;;  %v3347_v41 = vsel %vm3340_vm12, %v3338_v56, 0.0 }
 0x5d5   : > { %3350 = vxpose.xlu0.b32.cont [2/4] (short) (narrow) %v3342_v37, 8 }
 0x5d6   : > { %v3305_v43 = vpop.permute.xlu0 %3304  ;;  %v3307_v63 = vpop.permute.xlu1 %3306 }
 0x5d7   : > { %v3336_v49 = vsel %vm3331_vm11, %v3327_v33, %v3307_v63  ;;  %v3335_v22 = vsel %vm3331_vm11, %v3326_v10, %v3305_v43 }
 0x5d8   : > { %v3345_v44 = vsel %vm3340_vm12, %v3336_v49, 0.0  ;;  %v3344_v12 = vsel %vm3340_vm12, %v3335_v22, 0.0 }
 0x5d9   : > { %3351 = vxpose.xlu0.b32.cont [3/4] (short) (narrow) %v3343_v45, 8  ;;  %3382 = vxpose.xlu1.b32.start [1/4] (short) (narrow) %v3345_v44, 8 }
 0x5da   : > { %v3309_v47 = vpop.permute.xlu1 %3308 }
 0x5db   : > { %v3337_v32 = vsel %vm3331_vm11, %v3328_v30, %v3309_v47 }
 0x5dc   : > { %v3346_v57 = vsel %vm3340_vm12, %v3337_v32, 0.0 }
 0x5dd   : > { %3352 = vxpose.xlu0.b32.end [4/4] (short) (narrow) %v3344_v12, 8  ;;  %3383 = vxpose.xlu1.b32.cont [2/4] (short) (narrow) %v3346_v57, 8 }
 0x5de   : > { %v3313_v39 = vpop.permute.xlu1 %3312 }
 0x5df   : > { %v3339_v42 = vsel %vm3331_vm11, %v3330_v53, %v3313_v39 }
 0x5e0   : > { %v3348_v58 = vsel %vm3340_vm12, %v3339_v42, 0.0 }
 0x5e1   : > { %3384 = vxpose.xlu1.b32.cont [3/4] (short) (narrow) %v3347_v41, 8 }
 0x5e5   : > { %3385 = vxpose.xlu1.b32.end [4/4] (short) (narrow) %v3348_v58, 8 }
 0x651   : > { %v3365_v40 = vpop.trf.xlu0 }
 0x652   : > { %3381 = vst.msk [vmem:[%s408_s23] sm:$0xff] %vm543_vm4, %v3365_v40 }
 0x659   : > { %v3398_v26 = vpop.trf.xlu1 }
 0x65a   : > { %3720 = vst.msk [vmem:[%s408_s23 + $0x8] sm:$0xff] %vm543_vm4, %v3398_v26 }
 0x65b   : > { %4461 = shalt.err (!%p4458_p1)
}
 0x65c   : > { %s4462_s13 = scalar_lea.hbm %s5836_s15, 256  ;;  %s4466_s12 = scalar_lea.hbm %s5891_s11, 768 }
 0x65d   : > { %p4463_p2 = scmp.ne.s32.totalorder %s5836_s15, %s4462_s13  ;;  %p4467_p9 = scmp.lt.u32.totalorder %s5836_s15, %s5891_s11 }
 0x65e   : > { %p4468_p5 = scmp.lt.u32.totalorder %s4466_s12, %s4462_s13  ;;  %p4470_p10 = scmp.lt.u32.totalorder %s4462_s13, %s5836_s15 }
 0x65f   : > { %p4464_p3 = pnand %p4463_p2, %p5968_p12 }
 0x660   : > { %p4469_p6 = por %p4468_p5, %p4467_p9 }
 0x661   : > { %p4465_p4 = pneg %p4464_p3 }
 0x662   : > { %p4471_p0 = por %p4470_p10, %p4469_p6 }
 0x664   : > { %p4472_p7 = pnand %p4471_p0, %p4465_p4 }
 0x666   : > { %4475 = shalt.err (!%p4472_p7)
}
 0x667   : > { %s4528_s16 = smov 128   ;;  %s4529_s30 = smov 8  }
 0x668   : > { %4304 = dma.vmem_to_hbm [thread:$0]  (%p5968_p12), %s5831_s25, 256, %s5836_s15, %s5839_s17, %s4528_s16, %s4528_s16, %s4529_s30  }
 0x669 PF: > { %p4321_p8 = scmp.ge.s32.totalorder %s4518_s22, 2  ;;  %s3445_s18 = sand.u32 1, %s4506_s19  }
 0x66a   : > { %p5969_p11 = scmp.ne.s32.totalorder %s5913_s29, 0  ;;  %s3446_s13 = scalar_lea.sflag [#allocation4], %s3445_s18 }
 0x66c   : > { %p4314_p13 = pnand %p4321_p8, %p5969_p11 }
 0x66e   : > { %4501 = dma.done.wait (!%p4314_p13), %s3446_s13, 256  }
 0x66f   : > { %4503 = vsyncadd (!%p4314_p13), %s3446_s13, 4294967040  ;;  %p25_p1 = scmp.ge.s32.totalorder %s4618_s24, 5   ;;  %s5970_s19 = smov %s4510_s20 }
 0x670   : > { %s5971_s20 = smov %s4514_s21  ;;  %s5972_s21 = smov %s4629_s27 }
 0x671   : > { %s5973_s22 = smov %s4618_s24  ;;  %27 = sbr.rel (!%p25_p1) target bundleno = 8 (0x8), region = 124 }
 0x678   :  { %3451 = vsyncpa [#allocation4], 1 }
 0x679   :  { %3453 = vsyncpa [#allocation4 + $0x1], 1 }
 0x67a   :  { %3454 = vsyncpa [#allocation5], 1 }
 0x67b   :  { %3456 = vsyncpa [#allocation5 + $0x1], 1 }
 0x67c   :  { %3457 = vsyncpa [#allocation7], 1 }

</bundles_post_ra>
